<compile_context>
chip_gen: v6e
topology: v6e:2x2x1
jax: 0.10.0
libtpu: 0.0.40
codegen_flags: <defaults>
</compile_context>

<pallas_src>
import functools
import math

import jax
import jax.numpy as jnp
from jax import lax
from jax.experimental import pallas as pl
from jax.experimental.pallas import tpu as pltpu

_DECOV_STEPS = 17   # the PyTorch module hard-codes 17 timesteps in its DeCov loop


def _mha_kernel(q_ref, k_ref, v_ref,
                wq_ref, bq_ref, wk_ref, bk_ref, wv_ref, bv_ref,
                wo_ref, bo_ref,
                out_ref, ctx_ref, *, n_heads, d_k):
    """One batch element per grid step.  All refs are 2-D; lane dim = d_model."""
    # Q/K/V projections: [S, D] @ [D, D] on the MXU, f32 accumulation,
    # bias added as a fused epilogue on the f32 accumulator.
    q = jnp.dot(q_ref[...], wq_ref[...], preferred_element_type=jnp.float32) + bq_ref[...]
    k = jnp.dot(k_ref[...], wk_ref[...], preferred_element_type=jnp.float32) + bk_ref[...]
    v = jnp.dot(v_ref[...], wv_ref[...], preferred_element_type=jnp.float32) + bv_ref[...]

    inv_sqrt_dk = 1.0 / math.sqrt(d_k)
    head_ctx = []
    for head in range(n_heads):          # static unroll; heads are lane slices of D
        sl = slice(head * d_k, (head + 1) * d_k)
        qh, kh, vh = q[:, sl], k[:, sl], v[:, sl]
        # scores [S, S] = qh @ kh^T / sqrt(d_k)   (dot_general avoids a transpose)
        s = lax.dot_general(qh, kh, (((1,), (1,)), ((), ())),
                            preferred_element_type=jnp.float32) * inv_sqrt_dk
        # numerically-stable softmax over the key axis
        s = s - jnp.max(s, axis=-1, keepdims=True)
        e = jnp.exp(s)
        p = e / jnp.sum(e, axis=-1, keepdims=True)
        # (dropout on p_attn is identity in eval / p=0)
        head_ctx.append(jnp.dot(p, vh, preferred_element_type=jnp.float32))  # [S, d_k]

    # Concatenate heads in-register and do ONE lane-dense store of the context,
    # then reuse the same value for the output projection (single K=128 matmul).
    ctx = jnp.concatenate(head_ctx, axis=-1)                                 # [S, D]
    ctx_ref[...] = ctx.astype(ctx_ref.dtype)
    out = jnp.dot(ctx, wo_ref[...], preferred_element_type=jnp.float32) + bo_ref[...]
    out_ref[...] = out.astype(out_ref.dtype)


def _decov_kernel(ctx_ref, loss_ref):
    """DeCov loss over the first 17 timesteps of the attention context.

    torch: cov_t = (1/(B-1)) * Xc Xc^T  with Xc = centered ctx[:, t, :].T  ([D, B])
           loss  = sum_t 0.5 * (||cov_t||_F^2 - ||diag(cov_t)||^2)
    Uses tr((X^T X)^2) == tr((X X^T)^2): the Frobenius part is computed from the
    tiny BxB gram instead of the DxD covariance (mathematically identical).
    """
    c = ctx_ref[...].astype(jnp.float32)             # [B, S, D]
    B = c.shape[0]
    c = c[:, :_DECOV_STEPS, :]                       # the module only uses t = 0..16
    xc = c - jnp.mean(c, axis=0, keepdims=True)      # center over the batch axis

    # sum_{d,e} cov_t[d,e]^2 = (1/(B-1))^2 * sum_{b,b'} <xc[b,t,:], xc[b',t,:]>^2
    frob = 0.0
    for b1 in range(B):                              # static unroll; B is small here
        for b2 in range(B):
            g = jnp.sum(xc[b1] * xc[b2], axis=-1, keepdims=True)   # [T, 1]
            frob = frob + jnp.sum(g * g)
    # sum_d diag(cov_t)[d]^2 = (1/(B-1))^2 * sum_d (sum_b xc[b,t,d]^2)^2
    sq = jnp.sum(xc * xc, axis=0)                    # [T, D]
    diag = jnp.sum(sq * sq)

    loss = 0.5 * (frob - diag) / float((B - 1) ** 2)
    loss_ref[0, 0] = loss.astype(jnp.float32)


def multi_headed_attention(query, key, value,
                           wq, bq, wk, bk, wv, bv, wo, bo,
                           *, n_heads, mask=None):
    """Pallas version of ConCare MultiHeadedAttention.forward.

    query/key/value: [B, S, d_model].  Returns (out [B, S, d_model], DeCov_loss).
    """
    if mask is not None:
        raise NotImplementedError("TODO(synk): masked attention path")
    B, S, D = query.shape
    assert D % n_heads == 0
    d_k = D // n_heads
    assert S >= _DECOV_STEPS, "module's DeCov loop hard-codes 17 timesteps"

    bq2, bk2, bv2, bo2 = (b.reshape(1, D) for b in (bq, bk, bv, bo))

    def batch_spec():
        return pl.BlockSpec((None, S, D), lambda b: (b, 0, 0))

    def full_spec(shape):
        return pl.BlockSpec(shape, lambda b, _s=shape: (0,) * len(_s))

    flops = B * (8 * S * D * D + 4 * S * S * D)          # 4 projections + QK^T + PV
    transcendentals = B * n_heads * S * S                # softmax exp
    bytes_accessed = 4 * (6 * B * S * D + 4 * D * D + 4 * D)

    out, ctx = pl.pallas_call(
        functools.partial(_mha_kernel, n_heads=n_heads, d_k=d_k),
        grid=(B,),
        in_specs=[
            batch_spec(), batch_spec(), batch_spec(),
            full_spec((D, D)), full_spec((1, D)),    # Wq, bq   (grid-invariant)
            full_spec((D, D)), full_spec((1, D)),    # Wk, bk
            full_spec((D, D)), full_spec((1, D)),    # Wv, bv
            full_spec((D, D)), full_spec((1, D)),    # Wo, bo
        ],
        out_specs=(batch_spec(), batch_spec()),
        out_shape=(jax.ShapeDtypeStruct((B, S, D), query.dtype),   # final output
                   jax.ShapeDtypeStruct((B, S, D), jnp.float32)),  # attention context
        compiler_params=pltpu.CompilerParams(
            dimension_semantics=("parallel",)),      # batch steps shard across TCs
        cost_estimate=pl.CostEstimate(flops=flops,
                                      transcendentals=transcendentals,
                                      bytes_accessed=bytes_accessed),
    )(query, key, value, wq, bq2, wk, bk2, wv, bv2, wo, bo2)

    # DeCov needs every batch element per timestep -> one tiny single-step kernel.
    loss = pl.pallas_call(
        _decov_kernel,
        out_shape=jax.ShapeDtypeStruct((1, 1), jnp.float32),
        in_specs=[pl.BlockSpec(memory_space=pltpu.MemorySpace.VMEM)],
        out_specs=pl.BlockSpec(memory_space=pltpu.MemorySpace.SMEM),
    )(ctx)

    return out, loss[0, 0]


def _reference(q_in, k_in, v_in, wq, bq, wk, bk, wv, bv, wo, bo, n_heads):
    """Pure-JAX transcription of the PyTorch module (including the DeCov loop)."""
    B, S, D = q_in.shape
    d_k = D // n_heads

    def split_heads(x):
        return x.reshape(B, S, n_heads, d_k).transpose(0, 2, 1, 3)

    q = split_heads(q_in @ wq + bq)
    k = split_heads(k_in @ wk + bk)
    v = split_heads(v_in @ wv + bv)
    scores = jnp.einsum("bhqd,bhkd->bhqk", q, k) / math.sqrt(d_k)
    p = jax.nn.softmax(scores, axis=-1)
    ctx = jnp.einsum("bhqk,bhkd->bhqd", p, v).transpose(0, 2, 1, 3).reshape(B, S, D)
    out = ctx @ wo + bo

    dc = jnp.transpose(ctx, (1, 2, 0))            # [S, D, B], as in the torch code
    loss = 0.0
    for t in range(_DECOV_STEPS):
        m = dc[t]                                 # [D, B]
        xc = m - jnp.mean(m, axis=1, keepdims=True)
        covm = (xc @ xc.T) / (B - 1)
        loss = loss + 0.5 * (jnp.sum(covm ** 2) - jnp.sum(jnp.diag(covm) ** 2))
    return out, loss


if __name__ == "__main__":
    # Small shapes consistent with ConCare: batch=2, seq=17 (the DeCov loop
    # hard-codes 17 timesteps), d_model=128 (lane-dense), heads=4 (d_k=32).
    B, S, D, H = 2, 17, 128, 4
    key = jax.random.PRNGKey(0)
    ks = jax.random.split(key, 11)

    q_in = jax.random.normal(ks[0], (B, S, D), jnp.float32)
    k_in = jax.random.normal(ks[1], (B, S, D), jnp.float32)
    v_in = jax.random.normal(ks[2], (B, S, D), jnp.float32)

    bound = 1.0 / math.sqrt(D)

    def init(k, shape):
        return jax.random.uniform(k, shape, jnp.float32, -bound, bound)

    wq, bq = init(ks[3], (D, D)), init(ks[4], (1, D))
    wk, bk = init(ks[5], (D, D)), init(ks[6], (1, D))
    wv, bv = init(ks[7], (D, D)), init(ks[8], (1, D))
    wo, bo = init(ks[9], (D, D)), init(ks[10], (1, D))

    out, decov = multi_headed_attention(q_in, k_in, v_in,
                                        wq, bq, wk, bk, wv, bv, wo, bo,
                                        n_heads=H)
    out = jax.block_until_ready(out)
    decov = jax.block_until_ready(decov)

    ref_out, ref_decov = _reference(q_in, k_in, v_in,
                                    wq, bq, wk, bk, wv, bv, wo, bo, H)
    assert jnp.allclose(out, ref_out, atol=2e-3, rtol=2e-3), "attention output mismatch"
    rel = abs(float(decov) - float(ref_decov)) / max(abs(float(ref_decov)), 1e-6)
    assert rel < 2e-3, f"DeCov loss mismatch: {float(decov)} vs {float(ref_decov)}"

    print("KERNEL_OK")
</pallas_src>

<mosaic_0001>
module attributes {stable_mosaic.version = 11 : i64} {
  func.func @_mha_kernel(%arg0: i32, %arg1: memref<1x17x128xf32, #tpu.memory_space<vmem>>, %arg2: memref<1x17x128xf32, #tpu.memory_space<vmem>>, %arg3: memref<1x17x128xf32, #tpu.memory_space<vmem>>, %arg4: memref<128x128xf32, #tpu.memory_space<vmem>>, %arg5: memref<1x128xf32, #tpu.memory_space<vmem>>, %arg6: memref<128x128xf32, #tpu.memory_space<vmem>>, %arg7: memref<1x128xf32, #tpu.memory_space<vmem>>, %arg8: memref<128x128xf32, #tpu.memory_space<vmem>>, %arg9: memref<1x128xf32, #tpu.memory_space<vmem>>, %arg10: memref<128x128xf32, #tpu.memory_space<vmem>>, %arg11: memref<1x128xf32, #tpu.memory_space<vmem>>, %arg12: memref<1x17x128xf32, #tpu.memory_space<vmem>>, %arg13: memref<1x17x128xf32, #tpu.memory_space<vmem>>) attributes {dimension_semantics = [#tpu.dimension_semantics<parallel>], iteration_bounds = array<i64: 2>, scalar_prefetch = 0 : i64, scratch_operands = 0 : i64, tpu.core_type = #tpu.core_type<tc>, window_params = [{transform_indices = @transform_0, window_bounds = array<i64: 1, 17, 128>}, {transform_indices = @transform_1, window_bounds = array<i64: 1, 17, 128>}, {transform_indices = @transform_2, window_bounds = array<i64: 1, 17, 128>}, {pipeline_mode = #tpu.pipeline_mode<synchronous>, transform_indices = @transform_3, window_bounds = array<i64: 128, 128>}, {pipeline_mode = #tpu.pipeline_mode<synchronous>, transform_indices = @transform_4, window_bounds = array<i64: 1, 128>}, {pipeline_mode = #tpu.pipeline_mode<synchronous>, transform_indices = @transform_5, window_bounds = array<i64: 128, 128>}, {pipeline_mode = #tpu.pipeline_mode<synchronous>, transform_indices = @transform_6, window_bounds = array<i64: 1, 128>}, {pipeline_mode = #tpu.pipeline_mode<synchronous>, transform_indices = @transform_7, window_bounds = array<i64: 128, 128>}, {pipeline_mode = #tpu.pipeline_mode<synchronous>, transform_indices = @transform_8, window_bounds = array<i64: 1, 128>}, {pipeline_mode = #tpu.pipeline_mode<synchronous>, transform_indices = @transform_9, window_bounds = array<i64: 128, 128>}, {pipeline_mode = #tpu.pipeline_mode<synchronous>, transform_indices = @transform_10, window_bounds = array<i64: 1, 128>}, {transform_indices = @transform_11, window_bounds = array<i64: 1, 17, 128>}, {transform_indices = @transform_12, window_bounds = array<i64: 1, 17, 128>}]} {
    %c0 = arith.constant 0 : index
    %c0_0 = arith.constant 0 : index
    %c0_1 = arith.constant 0 : index
    %0 = vector.load %arg1[%c0, %c0_0, %c0_1] : memref<1x17x128xf32, #tpu.memory_space<vmem>>, vector<1x17x128xf32>
    %1 = vector.shape_cast %0 : vector<1x17x128xf32> to vector<17x128xf32>
    %c0_2 = arith.constant 0 : index
    %c0_3 = arith.constant 0 : index
    %2 = vector.load %arg4[%c0_2, %c0_3] : memref<128x128xf32, #tpu.memory_space<vmem>>, vector<128x128xf32>
    %cst = arith.constant dense<0.000000e+00> : vector<17x128xf32>
    %3 = tpu.matmul %1, %2, %cst {dimension_numbers = #tpu.dot_dimension_numbers<[1], [0], [0], [1], [0, 0, 1, 1], [], []>} : vector<17x128xf32>, vector<128x128xf32>, vector<17x128xf32> -> vector<17x128xf32>
    %c0_4 = arith.constant 0 : index
    %c0_5 = arith.constant 0 : index
    %4 = vector.load %arg5[%c0_4, %c0_5] : memref<1x128xf32, #tpu.memory_space<vmem>>, vector<1x128xf32>
    %5 = vector.broadcast %4 : vector<1x128xf32> to vector<17x128xf32>
    %6 = arith.addf %3, %5 : vector<17x128xf32>
    %c0_6 = arith.constant 0 : index
    %c0_7 = arith.constant 0 : index
    %c0_8 = arith.constant 0 : index
    %7 = vector.load %arg2[%c0_6, %c0_7, %c0_8] : memref<1x17x128xf32, #tpu.memory_space<vmem>>, vector<1x17x128xf32>
    %8 = vector.shape_cast %7 : vector<1x17x128xf32> to vector<17x128xf32>
    %c0_9 = arith.constant 0 : index
    %c0_10 = arith.constant 0 : index
    %9 = vector.load %arg6[%c0_9, %c0_10] : memref<128x128xf32, #tpu.memory_space<vmem>>, vector<128x128xf32>
    %cst_11 = arith.constant dense<0.000000e+00> : vector<17x128xf32>
    %10 = tpu.matmul %8, %9, %cst_11 {dimension_numbers = #tpu.dot_dimension_numbers<[1], [0], [0], [1], [0, 0, 1, 1], [], []>} : vector<17x128xf32>, vector<128x128xf32>, vector<17x128xf32> -> vector<17x128xf32>
    %c0_12 = arith.constant 0 : index
    %c0_13 = arith.constant 0 : index
    %11 = vector.load %arg7[%c0_12, %c0_13] : memref<1x128xf32, #tpu.memory_space<vmem>>, vector<1x128xf32>
    %12 = vector.broadcast %11 : vector<1x128xf32> to vector<17x128xf32>
    %13 = arith.addf %10, %12 : vector<17x128xf32>
    %c0_14 = arith.constant 0 : index
    %c0_15 = arith.constant 0 : index
    %c0_16 = arith.constant 0 : index
    %14 = vector.load %arg3[%c0_14, %c0_15, %c0_16] : memref<1x17x128xf32, #tpu.memory_space<vmem>>, vector<1x17x128xf32>
    %15 = vector.shape_cast %14 : vector<1x17x128xf32> to vector<17x128xf32>
    %c0_17 = arith.constant 0 : index
    %c0_18 = arith.constant 0 : index
    %16 = vector.load %arg8[%c0_17, %c0_18] : memref<128x128xf32, #tpu.memory_space<vmem>>, vector<128x128xf32>
    %cst_19 = arith.constant dense<0.000000e+00> : vector<17x128xf32>
    %17 = tpu.matmul %15, %16, %cst_19 {dimension_numbers = #tpu.dot_dimension_numbers<[1], [0], [0], [1], [0, 0, 1, 1], [], []>} : vector<17x128xf32>, vector<128x128xf32>, vector<17x128xf32> -> vector<17x128xf32>
    %c0_20 = arith.constant 0 : index
    %c0_21 = arith.constant 0 : index
    %18 = vector.load %arg9[%c0_20, %c0_21] : memref<1x128xf32, #tpu.memory_space<vmem>>, vector<1x128xf32>
    %19 = vector.broadcast %18 : vector<1x128xf32> to vector<17x128xf32>
    %20 = arith.addf %17, %19 : vector<17x128xf32>
    %21 = vector.extract_strided_slice %6 {offsets = [0, 0], sizes = [17, 32], strides = [1, 1]} : vector<17x128xf32> to vector<17x32xf32>
    %22 = vector.extract_strided_slice %13 {offsets = [0, 0], sizes = [17, 32], strides = [1, 1]} : vector<17x128xf32> to vector<17x32xf32>
    %23 = vector.extract_strided_slice %20 {offsets = [0, 0], sizes = [17, 32], strides = [1, 1]} : vector<17x128xf32> to vector<17x32xf32>
    %cst_22 = arith.constant dense<0.000000e+00> : vector<17x17xf32>
    %24 = tpu.matmul %21, %22, %cst_22 {dimension_numbers = #tpu.dot_dimension_numbers<[1], [1], [0], [0], [0, 0, 1, 0], [], []>} : vector<17x32xf32>, vector<17x32xf32>, vector<17x17xf32> -> vector<17x17xf32>
    %cst_23 = arith.constant 0.176776692 : f32
    %25 = vector.broadcast %cst_23 : f32 to vector<17x17xf32>
    %26 = arith.mulf %24, %25 : vector<17x17xf32>
    %cst_24 = arith.constant dense<0xFF800000> : vector<17xf32>
    %27 = vector.multi_reduction <maximumf>, %26, %cst_24 [1] : vector<17x17xf32> to vector<17xf32>
    %28 = vector.shape_cast %27 : vector<17xf32> to vector<17x1xf32>
    %29 = vector.broadcast %28 : vector<17x1xf32> to vector<17x17xf32>
    %30 = arith.subf %26, %29 : vector<17x17xf32>
    %31 = math.exp %30 : vector<17x17xf32>
    %cst_25 = arith.constant dense<0.000000e+00> : vector<17xf32>
    %32 = vector.multi_reduction <add>, %31, %cst_25 [1] : vector<17x17xf32> to vector<17xf32>
    %33 = vector.shape_cast %32 : vector<17xf32> to vector<17x1xf32>
    %34 = vector.broadcast %33 : vector<17x1xf32> to vector<17x17xf32>
    %35 = arith.divf %31, %34 : vector<17x17xf32>
    %cst_26 = arith.constant dense<0.000000e+00> : vector<17x32xf32>
    %36 = tpu.matmul %35, %23, %cst_26 {dimension_numbers = #tpu.dot_dimension_numbers<[1], [0], [0], [1], [0, 0, 1, 1], [], []>} : vector<17x17xf32>, vector<17x32xf32>, vector<17x32xf32> -> vector<17x32xf32>
    %37 = vector.extract_strided_slice %6 {offsets = [0, 32], sizes = [17, 32], strides = [1, 1]} : vector<17x128xf32> to vector<17x32xf32>
    %38 = vector.extract_strided_slice %13 {offsets = [0, 32], sizes = [17, 32], strides = [1, 1]} : vector<17x128xf32> to vector<17x32xf32>
    %39 = vector.extract_strided_slice %20 {offsets = [0, 32], sizes = [17, 32], strides = [1, 1]} : vector<17x128xf32> to vector<17x32xf32>
    %cst_27 = arith.constant dense<0.000000e+00> : vector<17x17xf32>
    %40 = tpu.matmul %37, %38, %cst_27 {dimension_numbers = #tpu.dot_dimension_numbers<[1], [1], [0], [0], [0, 0, 1, 0], [], []>} : vector<17x32xf32>, vector<17x32xf32>, vector<17x17xf32> -> vector<17x17xf32>
    %cst_28 = arith.constant 0.176776692 : f32
    %41 = vector.broadcast %cst_28 : f32 to vector<17x17xf32>
    %42 = arith.mulf %40, %41 : vector<17x17xf32>
    %cst_29 = arith.constant dense<0xFF800000> : vector<17xf32>
    %43 = vector.multi_reduction <maximumf>, %42, %cst_29 [1] : vector<17x17xf32> to vector<17xf32>
    %44 = vector.shape_cast %43 : vector<17xf32> to vector<17x1xf32>
    %45 = vector.broadcast %44 : vector<17x1xf32> to vector<17x17xf32>
    %46 = arith.subf %42, %45 : vector<17x17xf32>
    %47 = math.exp %46 : vector<17x17xf32>
    %cst_30 = arith.constant dense<0.000000e+00> : vector<17xf32>
    %48 = vector.multi_reduction <add>, %47, %cst_30 [1] : vector<17x17xf32> to vector<17xf32>
    %49 = vector.shape_cast %48 : vector<17xf32> to vector<17x1xf32>
    %50 = vector.broadcast %49 : vector<17x1xf32> to vector<17x17xf32>
    %51 = arith.divf %47, %50 : vector<17x17xf32>
    %cst_31 = arith.constant dense<0.000000e+00> : vector<17x32xf32>
    %52 = tpu.matmul %51, %39, %cst_31 {dimension_numbers = #tpu.dot_dimension_numbers<[1], [0], [0], [1], [0, 0, 1, 1], [], []>} : vector<17x17xf32>, vector<17x32xf32>, vector<17x32xf32> -> vector<17x32xf32>
    %53 = vector.extract_strided_slice %6 {offsets = [0, 64], sizes = [17, 32], strides = [1, 1]} : vector<17x128xf32> to vector<17x32xf32>
    %54 = vector.extract_strided_slice %13 {offsets = [0, 64], sizes = [17, 32], strides = [1, 1]} : vector<17x128xf32> to vector<17x32xf32>
    %55 = vector.extract_strided_slice %20 {offsets = [0, 64], sizes = [17, 32], strides = [1, 1]} : vector<17x128xf32> to vector<17x32xf32>
    %cst_32 = arith.constant dense<0.000000e+00> : vector<17x17xf32>
    %56 = tpu.matmul %53, %54, %cst_32 {dimension_numbers = #tpu.dot_dimension_numbers<[1], [1], [0], [0], [0, 0, 1, 0], [], []>} : vector<17x32xf32>, vector<17x32xf32>, vector<17x17xf32> -> vector<17x17xf32>
    %cst_33 = arith.constant 0.176776692 : f32
    %57 = vector.broadcast %cst_33 : f32 to vector<17x17xf32>
    %58 = arith.mulf %56, %57 : vector<17x17xf32>
    %cst_34 = arith.constant dense<0xFF800000> : vector<17xf32>
    %59 = vector.multi_reduction <maximumf>, %58, %cst_34 [1] : vector<17x17xf32> to vector<17xf32>
    %60 = vector.shape_cast %59 : vector<17xf32> to vector<17x1xf32>
    %61 = vector.broadcast %60 : vector<17x1xf32> to vector<17x17xf32>
    %62 = arith.subf %58, %61 : vector<17x17xf32>
    %63 = math.exp %62 : vector<17x17xf32>
    %cst_35 = arith.constant dense<0.000000e+00> : vector<17xf32>
    %64 = vector.multi_reduction <add>, %63, %cst_35 [1] : vector<17x17xf32> to vector<17xf32>
    %65 = vector.shape_cast %64 : vector<17xf32> to vector<17x1xf32>
    %66 = vector.broadcast %65 : vector<17x1xf32> to vector<17x17xf32>
    %67 = arith.divf %63, %66 : vector<17x17xf32>
    %cst_36 = arith.constant dense<0.000000e+00> : vector<17x32xf32>
    %68 = tpu.matmul %67, %55, %cst_36 {dimension_numbers = #tpu.dot_dimension_numbers<[1], [0], [0], [1], [0, 0, 1, 1], [], []>} : vector<17x17xf32>, vector<17x32xf32>, vector<17x32xf32> -> vector<17x32xf32>
    %69 = vector.extract_strided_slice %6 {offsets = [0, 96], sizes = [17, 32], strides = [1, 1]} : vector<17x128xf32> to vector<17x32xf32>
    %70 = vector.extract_strided_slice %13 {offsets = [0, 96], sizes = [17, 32], strides = [1, 1]} : vector<17x128xf32> to vector<17x32xf32>
    %71 = vector.extract_strided_slice %20 {offsets = [0, 96], sizes = [17, 32], strides = [1, 1]} : vector<17x128xf32> to vector<17x32xf32>
    %cst_37 = arith.constant dense<0.000000e+00> : vector<17x17xf32>
    %72 = tpu.matmul %69, %70, %cst_37 {dimension_numbers = #tpu.dot_dimension_numbers<[1], [1], [0], [0], [0, 0, 1, 0], [], []>} : vector<17x32xf32>, vector<17x32xf32>, vector<17x17xf32> -> vector<17x17xf32>
    %cst_38 = arith.constant 0.176776692 : f32
    %73 = vector.broadcast %cst_38 : f32 to vector<17x17xf32>
    %74 = arith.mulf %72, %73 : vector<17x17xf32>
    %cst_39 = arith.constant dense<0xFF800000> : vector<17xf32>
    %75 = vector.multi_reduction <maximumf>, %74, %cst_39 [1] : vector<17x17xf32> to vector<17xf32>
    %76 = vector.shape_cast %75 : vector<17xf32> to vector<17x1xf32>
    %77 = vector.broadcast %76 : vector<17x1xf32> to vector<17x17xf32>
    %78 = arith.subf %74, %77 : vector<17x17xf32>
    %79 = math.exp %78 : vector<17x17xf32>
    %cst_40 = arith.constant dense<0.000000e+00> : vector<17xf32>
    %80 = vector.multi_reduction <add>, %79, %cst_40 [1] : vector<17x17xf32> to vector<17xf32>
    %81 = vector.shape_cast %80 : vector<17xf32> to vector<17x1xf32>
    %82 = vector.broadcast %81 : vector<17x1xf32> to vector<17x17xf32>
    %83 = arith.divf %79, %82 : vector<17x17xf32>
    %cst_41 = arith.constant dense<0.000000e+00> : vector<17x32xf32>
    %84 = tpu.matmul %83, %71, %cst_41 {dimension_numbers = #tpu.dot_dimension_numbers<[1], [0], [0], [1], [0, 0, 1, 1], [], []>} : vector<17x17xf32>, vector<17x32xf32>, vector<17x32xf32> -> vector<17x32xf32>
    %85 = tpu.concatenate %36, %52, %68, %84 in 1 : vector<17x32xf32>, vector<17x32xf32>, vector<17x32xf32>, vector<17x32xf32> -> vector<17x128xf32>
    %c0_42 = arith.constant 0 : index
    %c0_43 = arith.constant 0 : index
    %c0_44 = arith.constant 0 : index
    %86 = vector.load %arg13[%c0_42, %c0_43, %c0_44] : memref<1x17x128xf32, #tpu.memory_space<vmem>>, vector<1x17x128xf32>
    %87 = vector.shape_cast %86 : vector<1x17x128xf32> to vector<17x128xf32>
    %88 = vector.shape_cast %85 : vector<17x128xf32> to vector<1x17x128xf32>
    tpu.vector_store %arg13[%c0_42, %c0_43, %c0_44], %88 {strides = array<i32>} : memref<1x17x128xf32, #tpu.memory_space<vmem>>, vector<1x17x128xf32>,
    %c0_45 = arith.constant 0 : index
    %c0_46 = arith.constant 0 : index
    %89 = vector.load %arg10[%c0_45, %c0_46] : memref<128x128xf32, #tpu.memory_space<vmem>>, vector<128x128xf32>
    %cst_47 = arith.constant dense<0.000000e+00> : vector<17x128xf32>
    %90 = tpu.matmul %85, %89, %cst_47 {dimension_numbers = #tpu.dot_dimension_numbers<[1], [0], [0], [1], [0, 0, 1, 1], [], []>} : vector<17x128xf32>, vector<128x128xf32>, vector<17x128xf32> -> vector<17x128xf32>
    %c0_48 = arith.constant 0 : index
    %c0_49 = arith.constant 0 : index
    %91 = vector.load %arg11[%c0_48, %c0_49] : memref<1x128xf32, #tpu.memory_space<vmem>>, vector<1x128xf32>
    %92 = vector.broadcast %91 : vector<1x128xf32> to vector<17x128xf32>
    %93 = arith.addf %90, %92 : vector<17x128xf32>
    %c0_50 = arith.constant 0 : index
    %c0_51 = arith.constant 0 : index
    %c0_52 = arith.constant 0 : index
    %94 = vector.load %arg12[%c0_50, %c0_51, %c0_52] : memref<1x17x128xf32, #tpu.memory_space<vmem>>, vector<1x17x128xf32>
    %95 = vector.shape_cast %94 : vector<1x17x128xf32> to vector<17x128xf32>
    %96 = vector.shape_cast %93 : vector<17x128xf32> to vector<1x17x128xf32>
    tpu.vector_store %arg12[%c0_50, %c0_51, %c0_52], %96 {strides = array<i32>} : memref<1x17x128xf32, #tpu.memory_space<vmem>>, vector<1x17x128xf32>,
    return
  }
  func.func @transform_0(%arg0: i32) -> (i32, i32, i32) {
    %c0_i32 = arith.constant 0 : i32
    %c0_i32_0 = arith.constant 0 : i32
    %c0_i32_1 = arith.constant 0 : i32
    return %arg0, %c0_i32, %c0_i32_0 : i32, i32, i32
  }
  func.func @transform_1(%arg0: i32) -> (i32, i32, i32) {
    %c0_i32 = arith.constant 0 : i32
    %c0_i32_0 = arith.constant 0 : i32
    %c0_i32_1 = arith.constant 0 : i32
    return %arg0, %c0_i32, %c0_i32_0 : i32, i32, i32
  }
  func.func @transform_2(%arg0: i32) -> (i32, i32, i32) {
    %c0_i32 = arith.constant 0 : i32
    %c0_i32_0 = arith.constant 0 : i32
    %c0_i32_1 = arith.constant 0 : i32
    return %arg0, %c0_i32, %c0_i32_0 : i32, i32, i32
  }
  func.func @transform_3(%arg0: i32) -> (i32, i32) {
    %c0_i32 = arith.constant 0 : i32
    %c0_i32_0 = arith.constant 0 : i32
    %c0_i32_1 = arith.constant 0 : i32
    return %c0_i32, %c0_i32_0 : i32, i32
  }
  func.func @transform_4(%arg0: i32) -> (i32, i32) {
    %c0_i32 = arith.constant 0 : i32
    %c0_i32_0 = arith.constant 0 : i32
    %c0_i32_1 = arith.constant 0 : i32
    return %c0_i32, %c0_i32_0 : i32, i32
  }
  func.func @transform_5(%arg0: i32) -> (i32, i32) {
    %c0_i32 = arith.constant 0 : i32
    %c0_i32_0 = arith.constant 0 : i32
    %c0_i32_1 = arith.constant 0 : i32
    return %c0_i32, %c0_i32_0 : i32, i32
  }
  func.func @transform_6(%arg0: i32) -> (i32, i32) {
    %c0_i32 = arith.constant 0 : i32
    %c0_i32_0 = arith.constant 0 : i32
    %c0_i32_1 = arith.constant 0 : i32
    return %c0_i32, %c0_i32_0 : i32, i32
  }
  func.func @transform_7(%arg0: i32) -> (i32, i32) {
    %c0_i32 = arith.constant 0 : i32
    %c0_i32_0 = arith.constant 0 : i32
    %c0_i32_1 = arith.constant 0 : i32
    return %c0_i32, %c0_i32_0 : i32, i32
  }
  func.func @transform_8(%arg0: i32) -> (i32, i32) {
    %c0_i32 = arith.constant 0 : i32
    %c0_i32_0 = arith.constant 0 : i32
    %c0_i32_1 = arith.constant 0 : i32
    return %c0_i32, %c0_i32_0 : i32, i32
  }
  func.func @transform_9(%arg0: i32) -> (i32, i32) {
    %c0_i32 = arith.constant 0 : i32
    %c0_i32_0 = arith.constant 0 : i32
    %c0_i32_1 = arith.constant 0 : i32
    return %c0_i32, %c0_i32_0 : i32, i32
  }
  func.func @transform_10(%arg0: i32) -> (i32, i32) {
    %c0_i32 = arith.constant 0 : i32
    %c0_i32_0 = arith.constant 0 : i32
    %c0_i32_1 = arith.constant 0 : i32
    return %c0_i32, %c0_i32_0 : i32, i32
  }
  func.func @transform_11(%arg0: i32) -> (i32, i32, i32) {
    %c0_i32 = arith.constant 0 : i32
    %c0_i32_0 = arith.constant 0 : i32
    %c0_i32_1 = arith.constant 0 : i32
    return %arg0, %c0_i32, %c0_i32_0 : i32, i32, i32
  }
  func.func @transform_12(%arg0: i32) -> (i32, i32, i32) {
    %c0_i32 = arith.constant 0 : i32
    %c0_i32_0 = arith.constant 0 : i32
    %c0_i32_1 = arith.constant 0 : i32
    return %arg0, %c0_i32, %c0_i32_0 : i32, i32, i32
  }
}

</mosaic_0001>

<bundles_post_ra>
// kernel: tpu_custom_call.1
= control target key start
LH: loop header
LB: loop body
LE: loop exit
PB: predicated region body
PF: predicated region fallthrough
CT: control target
= control target key end

     0   :  { %18 = vsyncpa [#allocation3], 0  ;;  %s3477_s0 = inlined_call_operand.vmem [shape: f32[2,17,128], index: 0, kind: input, shape index: {}]   ;;  %s3478_s1 = inlined_call_operand.vmem [shape: f32[2,17,128], index: 1, kind: input, shape index: {}]   ;;  %s3479_s2 = inlined_call_operand.vmem [shape: f32[2,17,128], index: 2, kind: input, shape index: {}]   ;;  %s3480_s3 = inlined_call_operand.vmem [shape: f32[128,128], index: 3, kind: input, shape index: {}]   ;;  %s3481_s4 = inlined_call_operand.hbm [shape: f32[1,128], index: 4, kind: input, shape index: {}]   ;;  %s3482_s5 = inlined_call_operand.hbm [shape: f32[128,128], index: 5, kind: input, shape index: {}]   ;;  %s3483_s6 = inlined_call_operand.hbm [shape: f32[1,128], index: 6, kind: input, shape index: {}]   ;;  %s3484_s7 = inlined_call_operand.vmem [shape: f32[128,128], index: 7, kind: input, shape index: {}]   ;;  %s3485_s8 = inlined_call_operand.vmem [shape: f32[1,128], index: 8, kind: input, shape index: {}]   ;;  %s3486_s9 = inlined_call_operand.hbm [shape: f32[128,128], index: 9, kind: input, shape index: {}]   ;;  %s3487_s10 = inlined_call_operand.vmem [shape: f32[1,128], index: 10, kind: input, shape index: {}]   ;;  %s3488_s11 = inlined_call_operand.vmem [shape: f32[2,17,128], index: 11, kind: output, shape index: {0}]   ;;  %s3489_s12 = inlined_call_operand.vmem [shape: f32[2,17,128], index: 12, kind: output, shape index: {1}]  }
   0x1   :  { %19 = vsyncpa [#allocation5], 0 }
   0x2   :  { %20 = vsyncpa [#allocation8], 0  ;;  %s2875_s21 = smov 0  }
   0x3 LB: > { %s2799_s22 = smov [#allocation4]   ;;  %s2881_s24 = sadd.s32 4294967295, %s2797_s21   ;;  %s2797_s21 = sphi %s2875_s21, %s26_s21  }
   0x4   : > { %s355_s23 = sshll.u32 %s2799_s22, 4  ;;  %p2100_p0 = scmp.ge.s32.totalorder %s2797_s21, 1  ;;  %s356_s23 = int_to_ptr.vmem [resolvable:$true] %s355_s23 }
   0x5   : > { %p329_p1 = scmp.lt.s32.totalorder %s2797_s21, 3  ;;  %p2600_p2 = scmp.eq.s32.totalorder %s2881_s24, 0 }
   0x6   : > { %s2800_s26 = smov [#allocation2]   ;;  %s2801_s29 = smov [#allocation6]  }
   0x7   : > { %p2886_p3 = pnand %p2100_p0, %p329_p1  ;;  %s345_s27 = sshll.u32 %s2800_s26, 4  ;;  %s2892_s27 = int_to_ptr.vmem [resolvable:$true] %s345_s27 }
   0x8   : > { %s369_s30 = sshll.u32 %s2801_s29, 4  ;;  %s2802_s13 = smov [#allocation7]   ;;  %s2900_s30 = int_to_ptr.vmem [resolvable:$true] %s369_s30 }
   0x9   : > { %p2587_p4 = pneg %p2886_p3  ;;  %s2902_s14 = sshll.u32 %s2802_s13, 4  ;;  %s386_s14 = int_to_ptr.vmem [resolvable:$true] %s2902_s14 }
   0xa   : > { %s2686_s15 = scalar_lea.vmem %s356_s23, 2048  ;;  %p2694_p10 = scmp.lt.s32.totalorder %s356_s23, %s356_s23 }
   0xb   : > { %p2896_p5 = pnand %p2600_p2, %p2587_p4  ;;  %p2687_p7 = scmp.ne.s32.totalorder %s356_s23, %s2686_s15 }
   0xc   : > { %p2695_p11 = scmp.lt.s32.totalorder %s2686_s15, %s2686_s15 }
   0xd   : > { %p2677_p6 = pneg %p2896_p5 }
   0xe   : > { %p2696_p12 = por %p2695_p11, %p2694_p10 }
   0xf   : > { %p2689_p8 = pnand %p2687_p7, %p2677_p6 }
  0x11   : > { %p2690_p9 = pneg %p2689_p8 }
  0x13   : > { %p2697_p13 = pnand %p2696_p12, %p2690_p9 }
  0x15   : > { %2700 = shalt.err (!%p2697_p13)
}
  0x16   : > { %s2803_s16 = smov 128   ;;  %s2804_s17 = smov 8  }
  0x17   : > { %2593 = dma.hbm_to_vmem [thread:$0]  (!%p2896_p5), %s3482_s5, 2048, %s356_s23, [#allocation5], %s2803_s16, %s2803_s16, %s2804_s17  }
  0x18   : > { %s2712_s20 = scalar_lea.vmem %s2892_s27, 16  ;;  %s2719_s22 = scalar_lea.vmem %s2892_s27, 32 }
  0x19   : > { %p2713_p0 = scmp.ne.s32.totalorder %s2892_s27, %s2712_s20  ;;  %p2720_p7 = scmp.lt.s32.totalorder %s2892_s27, %s2892_s27 }
  0x1a   : > { %p2721_p8 = scmp.lt.s32.totalorder %s2719_s22, %s2712_s20 }
  0x1b   : > { %p2715_p1 = pnand %p2713_p0, %p2677_p6 }
  0x1c   : > { %p2722_p9 = por %p2721_p8, %p2720_p7 }
  0x1d   : > { %p2716_p4 = pneg %p2715_p1 }
  0x1f   : > { %p2723_p10 = pnand %p2722_p9, %p2716_p4 }
  0x21   : > { %2726 = shalt.err (!%p2723_p10)
}
  0x22   : > { %2590 = dma.hbm_to_vmem [thread:$0]  (!%p2896_p5), %s3481_s4, 16, %s2892_s27, [#allocation3]  }
  0x23   : > { %s2738_s23 = scalar_lea.vmem %s2900_s30, 16  ;;  %s2745_s13 = scalar_lea.vmem %s2900_s30, 32 }
  0x24   : > { %p2739_p11 = scmp.ne.s32.totalorder %s2900_s30, %s2738_s23  ;;  %p2746_p0 = scmp.lt.s32.totalorder %s2900_s30, %s2900_s30 }
  0x25   : > { %p2747_p1 = scmp.lt.s32.totalorder %s2745_s13, %s2738_s23 }
  0x26   : > { %p2741_p12 = pnand %p2739_p11, %p2677_p6 }
  0x27   : > { %p2748_p4 = por %p2747_p1, %p2746_p0 }
  0x28   : > { %p2742_p13 = pneg %p2741_p12 }
  0x2a   : > { %p2749_p7 = pnand %p2748_p4, %p2742_p13 }
  0x2c   : > { %2752 = shalt.err (!%p2749_p7)
}
  0x2d   : > { %2596 = dma.hbm_to_vmem [thread:$0]  (!%p2896_p5), %s3483_s6, 16, %s2900_s30, [#allocation5]  }
  0x2e   : > { %s2764_s27 = scalar_lea.vmem %s386_s14, 2048  ;;  %p2772_p11 = scmp.lt.s32.totalorder %s386_s14, %s386_s14 }
  0x2f   : > { %p2765_p8 = scmp.ne.s32.totalorder %s386_s14, %s2764_s27  ;;  %p2773_p12 = scmp.lt.s32.totalorder %s2764_s27, %s2764_s27 }
  0x31   : > { %p2767_p9 = pnand %p2765_p8, %p2677_p6  ;;  %p2774_p13 = por %p2773_p12, %p2772_p11 }
  0x33   : > { %p2768_p10 = pneg %p2767_p9 }
  0x35   : > { %p2775_p0 = pnand %p2774_p13, %p2768_p10 }
  0x37   : > { %2778 = shalt.err (!%p2775_p0)
}
  0x38   : > { %2599 = dma.hbm_to_vmem [thread:$0]  (!%p2896_p5), %s3486_s9, 2048, %s386_s14, [#allocation8], %s2803_s16, %s2803_s16, %s2804_s17  }
  0x39   : > { %428 = sbr.rel (%p2886_p3) target bundleno = 1977 (0x7b9), region = 64 }
  0x3e   : > { %2784 = dma.done.wait (%p2600_p2), [#allocation3], 16  }
  0x3f   : > { %2786 = vsyncadd (%p2600_p2), [#allocation3], 4294967280 }
  0x40   : > { %2788 = dma.done.wait (%p2600_p2), [#allocation5], 2064  }
  0x41   : > { %2790 = vsyncadd (%p2600_p2), [#allocation5], 4294965232 }
  0x42   : > { %2792 = dma.done.wait (%p2600_p2), [#allocation8], 2048  }
  0x43   : > { %2794 = vsyncadd (%p2600_p2), [#allocation8], 4294965248  ;;  %v2805_v0 = vmov 0.0   ;;  %vm2806_vm0 = vmmov 0   ;;  %v646_v1 = vld [vmem:[#allocation4 + $0x78] sm:$0xff]  ;;  %v645_v2 = vld [vmem:[#allocation4 + $0x70] sm:$0xff] }
  0x44   : > { %2327 = vmatprep.subr.mxu1 %v2805_v0  ;;  %2286 = vmatprep.subr.mxu0 %v2805_v0  ;;  %v644_v3 = vld [vmem:[#allocation4 + $0x68] sm:$0xff]  ;;  %v540_v4 = vld [vmem:[%s3480_s3 + $0x78] sm:$0xff]  ;;  %v643_v6 = vld [vmem:[#allocation4 + $0x60] sm:$0xff]  ;;  %p497_p2 = scmp.lt.s32.totalorder %s2881_s24, 1  ;;  %vm840_vm1 = vcmask 261120   ;;  %vm986_vm2 = vcmask 1040384  }
  0x45   : > { %2359 = vmatprep.mubr.msk.f32.mxu1 %vm2806_vm0, %v2805_v0  ;;  %2318 = vmatprep.mubr.msk.f32.mxu0 %vm2806_vm0, %v2805_v0  ;;  %v539_v5 = vld [vmem:[%s3480_s3 + $0x70] sm:$0xff]  ;;  %v538_v7 = vld [vmem:[%s3480_s3 + $0x68] sm:$0xff]  ;;  %v642_v8 = vld [vmem:[#allocation4 + $0x58] sm:$0xff]  ;;  %vm942_vm3 = vcmask 138240   ;;  %vm949_vm4 = vcmask 131072   ;;  %s2807_s15 = smov 96  }
  0x46   : > { %2328 = vmatpush3.msra.mxu1 %v646_v1  ;;  %2287 = vmatpush3.msra.mxu0 %v540_v4  ;;  %v537_v9 = vld [vmem:[%s3480_s3 + $0x60] sm:$0xff]  ;;  %v641_v10 = vld [vmem:[#allocation4 + $0x50] sm:$0xff]  ;;  %v640_v12 = vld [vmem:[#allocation4 + $0x48] sm:$0xff]  ;;  %s3493_s24 = smov (!%p497_p2, %s2881_s24), 1  ;;  %s2809_s27 = smov 32   ;;  %vm1828_vm5 = vcmask 523264  }
  0x47   : > { %2329 = vmatprep.subr.mxu1 %v2805_v0  ;;  %2288 = vmatprep.subr.mxu0 %v2805_v0  ;;  %v536_v11 = vld [vmem:[%s3480_s3 + $0x58] sm:$0xff]  ;;  %v535_v13 = vld [vmem:[%s3480_s3 + $0x50] sm:$0xff]  ;;  %v639_v14 = vld [vmem:[#allocation4 + $0x40] sm:$0xff]  ;;  %s3032_s22 = smul.u32 24, %s3493_s24  ;;  %vm1832_vm6 = vcmask 785408  }
  0x48   : > { %2330 = vmatpush3.msra.mxu1 %v645_v2  ;;  %2289 = vmatpush3.msra.mxu0 %v539_v5  ;;  %v534_v15 = vld [vmem:[%s3480_s3 + $0x48] sm:$0xff]  ;;  %v638_v16 = vld [vmem:[#allocation4 + $0x38] sm:$0xff]  ;;  %v637_v18 = vld [vmem:[#allocation4 + $0x30] sm:$0xff] }
  0x49   : > { %2331 = vmatprep.subr.mxu1 %v2805_v0  ;;  %2290 = vmatprep.subr.mxu0 %v2805_v0  ;;  %v533_v17 = vld [vmem:[%s3480_s3 + $0x40] sm:$0xff]  ;;  %v532_v19 = vld [vmem:[%s3480_s3 + $0x38] sm:$0xff]  ;;  %v636_v20 = vld [vmem:[#allocation4 + $0x28] sm:$0xff]  ;;  %s3048_s18 = scalar_lea.vmem %s3478_s1, %s3032_s22  ;;  %s501_s14 = scalar_lea.vmem %s3477_s0, %s3032_s22 }
  0x4a   : > { %2332 = vmatpush3.msra.mxu1 %v644_v3  ;;  %2291 = vmatpush3.msra.mxu0 %v538_v7  ;;  %v531_v21 = vld [vmem:[%s3480_s3 + $0x30] sm:$0xff]  ;;  %v635_v22 = vld [vmem:[#allocation4 + $0x20] sm:$0xff]  ;;  %v634_v24 = vld [vmem:[#allocation4 + $0x18] sm:$0xff]  ;;  %s511_s26 = scalar_lea.vmem %s3479_s2, %s3032_s22  ;;  %s521_s25 = scalar_lea.vmem %s3489_s12, %s3032_s22 }
  0x4b   : > { %2333 = vmatprep.subr.mxu1 %v2805_v0  ;;  %2292 = vmatprep.subr.mxu0 %v2805_v0  ;;  %v530_v23 = vld [vmem:[%s3480_s3 + $0x28] sm:$0xff]  ;;  %v529_v25 = vld [vmem:[%s3480_s3 + $0x20] sm:$0xff]  ;;  %v633_v26 = vld [vmem:[#allocation4 + $0x10] sm:$0xff]  ;;  %s516_s17 = scalar_lea.vmem %s3488_s11, %s3032_s22 }
  0x4c   : > { %2334 = vmatpush3.msra.mxu1 %v643_v6  ;;  %2293 = vmatpush3.msra.mxu0 %v537_v9  ;;  %v528_v27 = vld [vmem:[%s3480_s3 + $0x18] sm:$0xff]  ;;  %v632_v28 = vld [vmem:[#allocation4 + $0x8] sm:$0xff]  ;;  %v631_v30 = vld [vmem:[#allocation4] sm:$0xff] }
  0x4d   : > { %2335 = vmatprep.subr.mxu1 %v2805_v0  ;;  %2294 = vmatprep.subr.mxu0 %v2805_v0  ;;  %v527_v29 = vld [vmem:[%s3480_s3 + $0x10] sm:$0xff]  ;;  %v628_v31 = vld [vmem:[%s3048_s18] sm:$0xff]  ;;  %v526_v32 = vld [vmem:[%s3480_s3 + $0x8] sm:$0xff] }
  0x4e   : > { %2336 = vmatpush3.msra.mxu1 %v642_v8  ;;  %2295 = vmatpush3.msra.mxu0 %v536_v11  ;;  %v525_v33 = vld [vmem:[%s3480_s3] sm:$0xff]  ;;  %v629_v35 = vld [vmem:[%s3048_s18 + $0x8] sm:$0xff]  ;;  %v752_v36 = vld [vmem:[%s3484_s7 + $0x78] sm:$0xff] }
  0x4f   : > { %2337 = vmatprep.subr.mxu1 %v2805_v0  ;;  %2296 = vmatprep.subr.mxu0 %v2805_v0  ;;  %v522_v34 = vld [vmem:[%s501_s14] sm:$0xff]  ;;  %v523_v37 = vld [vmem:[%s501_s14 + $0x8] sm:$0xff]  ;;  %v630_v38 = vld [vmem:[%s3048_s18 + $0x10] sm:$0x1]  ;;  %s2808_s18 = smov 64  }
  0x50   : > { %2338 = vmatpush3.msra.mxu1 %v641_v10  ;;  %2297 = vmatpush3.msra.mxu0 %v535_v13  ;;  %v751_v39 = vld [vmem:[%s3484_s7 + $0x70] sm:$0xff]  ;;  %v750_v41 = vld [vmem:[%s3484_s7 + $0x68] sm:$0xff]  ;;  %v749_v42 = vld [vmem:[%s3484_s7 + $0x60] sm:$0xff] }
  0x51   : > { %2339 = vmatprep.subr.mxu1 %v2805_v0  ;;  %2298 = vmatprep.subr.mxu0 %v2805_v0  ;;  %v524_v40 = vld [vmem:[%s501_s14 + $0x10] sm:$0x1]  ;;  %v748_v43 = vld [vmem:[%s3484_s7 + $0x58] sm:$0xff]  ;;  %v746_v45 = vld [vmem:[%s3484_s7 + $0x48] sm:$0xff] }
  0x52   : > { %2340 = vmatpush3.msra.mxu1 %v640_v12  ;;  %2299 = vmatpush3.msra.mxu0 %v534_v15  ;;  %v747_v44 = vld [vmem:[%s3484_s7 + $0x50] sm:$0xff]  ;;  %v745_v46 = vld [vmem:[%s3484_s7 + $0x40] sm:$0xff]  ;;  %v744_v47 = vld [vmem:[%s3484_s7 + $0x38] sm:$0xff] }
  0x53   : > { %2341 = vmatprep.subr.mxu1 %v2805_v0  ;;  %2300 = vmatprep.subr.mxu0 %v2805_v0  ;;  %v743_v48 = vld [vmem:[%s3484_s7 + $0x30] sm:$0xff]  ;;  %v742_v49 = vld [vmem:[%s3484_s7 + $0x28] sm:$0xff]  ;;  %v741_v50 = vld [vmem:[%s3484_s7 + $0x20] sm:$0xff] }
  0x54   : > { %2342 = vmatpush3.msra.mxu1 %v639_v14  ;;  %2301 = vmatpush3.msra.mxu0 %v533_v17  ;;  %v740_v51 = vld [vmem:[%s3484_s7 + $0x18] sm:$0xff]  ;;  %v739_v52 = vld [vmem:[%s3484_s7 + $0x10] sm:$0xff]  ;;  %v738_v53 = vld [vmem:[%s3484_s7 + $0x8] sm:$0xff] }
  0x55   : > { %2343 = vmatprep.subr.mxu1 %v2805_v0  ;;  %2302 = vmatprep.subr.mxu0 %v2805_v0  ;;  %v737_v54 = vld [vmem:[%s3484_s7] sm:$0xff]  ;;  %v735_v56 = vld [vmem:[%s511_s26 + $0x8] sm:$0xff]  ;;  %v736_v57 = vld [vmem:[%s511_s26 + $0x10] sm:$0x1] }
  0x56   : > { %2344 = vmatpush3.msra.mxu1 %v638_v16  ;;  %2303 = vmatpush3.msra.mxu0 %v532_v19  ;;  %v734_v55 = vld [vmem:[%s511_s26] sm:$0xff] }
  0x57   : > { %2345 = vmatprep.subr.mxu1 %v2805_v0  ;;  %2304 = vmatprep.subr.mxu0 %v2805_v0  ;;  %v2117_v2 = vld [vmem:[#allocation6] ss:$0 sm:$0xff]  ;;  %v2116_v10 = vld [vmem:[#allocation2] ss:$0 sm:$0xff] }
  0x58   : > { %2346 = vmatpush3.msra.mxu1 %v637_v18  ;;  %2305 = vmatpush3.msra.mxu0 %v531_v21  ;;  %v2118_v18 = vld [vmem:[%s3485_s8] ss:$0 sm:$0xff] }
  0x59   : > { %2347 = vmatprep.subr.mxu1 %v2805_v0  ;;  %2306 = vmatprep.subr.mxu0 %v2805_v0 }
  0x5a   : > { %2348 = vmatpush3.msra.mxu1 %v636_v20  ;;  %2307 = vmatpush3.msra.mxu0 %v530_v23 }
  0x5b   : > { %2349 = vmatprep.subr.mxu1 %v2805_v0  ;;  %2308 = vmatprep.subr.mxu0 %v2805_v0 }
  0x5c   : > { %2350 = vmatpush3.msra.mxu1 %v635_v22  ;;  %2309 = vmatpush3.msra.mxu0 %v529_v25 }
  0x5d   : > { %2351 = vmatprep.subr.mxu1 %v2805_v0  ;;  %2310 = vmatprep.subr.mxu0 %v2805_v0 }
  0x5e   : > { %2352 = vmatpush3.msra.mxu1 %v634_v24  ;;  %2311 = vmatpush3.msra.mxu0 %v528_v27 }
  0x5f   : > { %2353 = vmatprep.subr.mxu1 %v2805_v0  ;;  %2312 = vmatprep.subr.mxu0 %v2805_v0 }
  0x60   : > { %2354 = vmatpush3.msra.mxu1 %v633_v26  ;;  %2313 = vmatpush3.msra.mxu0 %v527_v29 }
  0x61   : > { %2355 = vmatprep.subr.mxu1 %v2805_v0  ;;  %2314 = vmatprep.subr.mxu0 %v2805_v0 }
  0x62   : > { %2356 = vmatpush3.msra.mxu1 %v632_v28  ;;  %2315 = vmatpush3.msra.mxu0 %v526_v32 }
  0x63   : > { %2357 = vmatprep.subr.mxu1 %v2805_v0  ;;  %2316 = vmatprep.subr.mxu0 %v2805_v0 }
  0x64   : > { %2358 = vmatpush3.msra.mxu1 %v631_v30  ;;  %2317 = vmatpush3.msra.mxu0 %v525_v33 }
  0x65   : > { %2360 = vmatmul.mubr.f32.vlgmr.msra.gmra.mxu1 %v628_v31  ;;  %2424 = vmatprep.subr.mxu1 %v2805_v0 }
  0x66   : > { %2362 = vmatprep.mubr.msk.f32.mxu1 %vm2806_vm0, %v2805_v0  ;;  %2319 = vmatmul.mubr.f32.vlgmr.msra.gmra.mxu0 %v522_v34 }
  0x67   : > { %2368 = vmatprep.subr.mxu0 %v2805_v0  ;;  %2321 = vmatprep.mubr.msk.f32.mxu0 %vm2806_vm0, %v2805_v0 }
  0x68   : > { %2369 = vmatpush3.msra.mxu0 %v752_v36 }
  0x69   : > { %2363 = vmatmul.mubr.f32.gmra.mxu1 %v629_v35  ;;  %2370 = vmatprep.subr.mxu0 %v2805_v0 }
  0x6a   : > { %2365 = vmatprep.mubr.msk.f32.mxu1 %vm2806_vm0, %v2805_v0  ;;  %2322 = vmatmul.mubr.f32.gmra.mxu0 %v523_v37 }
  0x6b   : > { %2324 = vmatprep.mubr.msk.f32.mxu0 %vm2806_vm0, %v2805_v0  ;;  %2371 = vmatpush3.msra.mxu0 %v751_v39 }
  0x6c   : > { %2372 = vmatprep.subr.mxu0 %v2805_v0 }
  0x6d   : > { %2366 = vmatmul.mubr.f32.gmra.mxu1 %v630_v38  ;;  %2373 = vmatpush3.msra.mxu0 %v750_v41 }
  0x6e   : > { %2430 = vmatprep.mubr.msk.f32.mxu1 %vm2806_vm0, %v2805_v0  ;;  %2325 = vmatmul.mubr.f32.gmra.mxu0 %v524_v40 }
  0x6f   : > { %2400 = vmatprep.mubr.msk.f32.mxu0 %vm2806_vm0, %v2805_v0  ;;  %2374 = vmatprep.subr.mxu0 %v2805_v0 }
  0x70   : > { %2375 = vmatpush3.msra.mxu0 %v749_v42 }
  0x71   : > { %2376 = vmatprep.subr.mxu0 %v2805_v0 }
  0x72   : > { %2377 = vmatpush3.msra.mxu0 %v748_v43 }
  0x73   : > { %2378 = vmatprep.subr.mxu0 %v2805_v0 }
  0x74   : > { %2379 = vmatpush3.msra.mxu0 %v747_v44 }
  0x75   : > { %2380 = vmatprep.subr.mxu0 %v2805_v0 }
  0x76   : > { %2381 = vmatpush3.msra.mxu0 %v746_v45 }
  0x77   : > { %2382 = vmatprep.subr.mxu0 %v2805_v0 }
  0x78   : > { %2383 = vmatpush3.msra.mxu0 %v745_v46 }
  0x79   : > { %2384 = vmatprep.subr.mxu0 %v2805_v0 }
  0x7a   : > { %2385 = vmatpush3.msra.mxu0 %v744_v47 }
  0x7b   : > { %2386 = vmatprep.subr.mxu0 %v2805_v0 }
  0x7c   : > { %2387 = vmatpush3.msra.mxu0 %v743_v48 }
  0x7d   : > { %2388 = vmatprep.subr.mxu0 %v2805_v0 }
  0x7e   : > { %2389 = vmatpush3.msra.mxu0 %v742_v49 }
  0x7f   : > { %2390 = vmatprep.subr.mxu0 %v2805_v0 }
  0x80   : > { %2391 = vmatpush3.msra.mxu0 %v741_v50 }
  0x81   : > { %2392 = vmatprep.subr.mxu0 %v2805_v0 }
  0x82   : > { %2393 = vmatpush3.msra.mxu0 %v740_v51 }
  0x83   : > { %2394 = vmatprep.subr.mxu0 %v2805_v0 }
  0x84   : > { %2395 = vmatpush3.msra.mxu0 %v739_v52 }
  0x85   : > { %2396 = vmatprep.subr.mxu0 %v2805_v0 }
  0x86   : > { %2397 = vmatpush3.msra.mxu0 %v738_v53 }
  0x87   : > { %2398 = vmatprep.subr.mxu0 %v2805_v0 }
  0x88   : > { %2399 = vmatpush3.msra.mxu0 %v737_v54 }
  0x89   : > { %2401 = vmatmul.mubr.f32.vlgmr.msra.gmra.mxu0 %v734_v55  ;;  %2409 = vmatprep.subr.mxu0 %v2805_v0 }
  0x8a   : > { %2403 = vmatprep.mubr.msk.f32.mxu0 %vm2806_vm0, %v2805_v0 }
  0x8d   : > { %2404 = vmatmul.mubr.f32.gmra.mxu0 %v735_v56 }
  0x8e   : > { %2406 = vmatprep.mubr.msk.f32.mxu0 %vm2806_vm0, %v2805_v0 }
  0x91   : > { %2407 = vmatmul.mubr.f32.gmra.mxu0 %v736_v57 }
  0x92   : > { %2415 = vmatprep.mubr.msk.f32.mxu0 %vm2806_vm0, %v2805_v0 }
 0x125   : > { %v720_v58 = vpop.f32.mrf.mxu1 }
 0x126   : > { %v614_v60 = vpop.f32.mrf.mxu0  ;;  %v3170_v11 = vadd.f32 %v2117_v2, %v720_v58 }
 0x127   : > { %v2361_v59 = vpop.f32.mrf.mxu1  ;;  %v3172_v12 = vadd.f32 %v2116_v10, %v614_v60 }
 0x128   : > { %v2320_v62 = vpop.f32.mrf.mxu0 }
 0x129   : > { %v725_v61 = vpop.f32.mrf.mxu1 }
 0x12a   : > { %v619_v1 = vpop.f32.mrf.mxu0  ;;  %v3165_v8 = vadd.f32 %v2117_v2, %v725_v61 }
 0x12b   : > { %v2364_v63 = vpop.f32.mrf.mxu1  ;;  %v3179_v13 = vadd.f32 %v2116_v10, %v619_v1 }
 0x12c   : > { %v2323_v5 = vpop.f32.mrf.mxu0 }
 0x12d   : > { %v730_v3 = vpop.f32.mrf.mxu1 }
 0x12e   : > { %v3160_v4 = vadd.f32 %v2117_v2, %v730_v3  ;;  %v624_v7 = vpop.f32.mrf.mxu0 }
 0x12f   : > { %v2367_v6 = vpop.f32.mrf.mxu1  ;;  %v3185_v14 = vadd.f32 %v2116_v10, %v624_v7 }
 0x130   : > { %2410 = vmatpush3.xpose.msk.msra.mxu0 %vm840_vm1, %v3160_v4  ;;  %v2326_v9 = vpop.f32.mrf.mxu0 }
 0x131   : > { %2411 = vmatprep.subr.mxu0 %v2805_v0 }
 0x134   : > { %2412 = vmatpush3.xpose.msk.msra.mxu0 %vm840_vm1, %v3165_v8 }
 0x135   : > { %2413 = vmatprep.subr.mxu0 %v2805_v0 }
 0x138   : > { %2414 = vmatpush3.xpose.msk.msra.mxu0 %vm840_vm1, %v3170_v11 }
 0x139   : > { %2454 = vmatprep.subr.mxu0 %v2805_v0 }
 0x13b   : > { %2416 = vmatmul.mubr.msk.f32.vlgmr.msra.gmra.mxu0 %vm840_vm1, %v3172_v12 }
 0x13c   : > { %2418 = vmatprep.mubr.msk.f32.mxu0 %vm2806_vm0, %v2805_v0 }
 0x13f   : > { %2419 = vmatmul.mubr.msk.f32.gmra.mxu0 %vm840_vm1, %v3179_v13 }
 0x140   : > { %2421 = vmatprep.mubr.msk.f32.mxu0 %vm2806_vm0, %v2805_v0 }
 0x143   : > { %2422 = vmatmul.mubr.msk.f32.gmra.mxu0 %vm840_vm1, %v3185_v14 }
 0x144   : > { %2460 = vmatprep.mubr.msk.f32.mxu0 %vm2806_vm0, %v2805_v0 }
 0x149   : > { %v826_v15 = vpop.f32.mrf.mxu0 }
 0x14a   : > { %v3200_v24 = vadd.f32 %v2118_v18, %v826_v15 }
 0x14b   : > { %v2402_v16 = vpop.f32.mrf.mxu0 }
 0x14d   : > { %v831_v17 = vpop.f32.mrf.mxu0 }
 0x14e   : > { %v3196_v21 = vadd.f32 %v2118_v18, %v831_v17 }
 0x14f   : > { %v2405_v19 = vpop.f32.mrf.mxu0 }
 0x151   : > { %v836_v20 = vpop.f32.mrf.mxu0 }
 0x152   : > { %v3198_v22 = vadd.f32 %v2118_v18, %v836_v20 }
 0x153   : > { %v2408_v23 = vpop.f32.mrf.mxu0 }
 0x154   : > { %2425 = vmatpush3.msk.msra.mxu1 %vm986_vm2, %v3198_v22 }
 0x155   : > { %2426 = vmatprep.subr.mxu1 %v2805_v0 }
 0x156   : > { %2427 = vmatpush3.msra.mxu1 %v3196_v21 }
 0x157   : > { %2428 = vmatprep.subr.mxu1 %v2805_v0 }
 0x158   : > { %2429 = vmatpush3.msra.mxu1 %v3200_v24 }
 0x159   : > { %2439 = vmatprep.subr.mxu1 %v2805_v0 }
 0x1fb   : > { %v925_v25 = vpop.f32.mrf.mxu0 }
 0x1fc   : > { %v939_v26 = vmul.f32 0.17677669, %v925_v25 }
 0x1fd   : > { %v2417_v27 = vpop.f32.mrf.mxu0 }
 0x1fe   : > { %v943_v28 = vsel %vm942_vm3, %v939_v26, -inf }
 0x1ff   : > { %944 = vmax.xlane.f32.xlu0 %v943_v28  ;;  %v930_v29 = vpop.f32.mrf.mxu0 }
 0x200   : > { %v940_v30 = vmul.f32 0.17677669, %v930_v29 }
 0x201   : > { %v2420_v31 = vpop.f32.mrf.mxu0 }
 0x202   : > { %v946_v32 = vsel %vm942_vm3, %v940_v30, -inf }
 0x203   : > { %947 = vmax.xlane.f32.xlu0 %v946_v32  ;;  %v935_v33 = vpop.f32.mrf.mxu0 }
 0x204   : > { %v941_v34 = vmul.f32 0.17677669, %v935_v33 }
 0x205   : > { %v2423_v35 = vpop.f32.mrf.mxu0 }
 0x206   : > { %v950_v36 = vsel %vm949_vm4, %v941_v34, -inf }
 0x207   : > { %951 = vmax.xlane.f32.xlu1 %v950_v36 }
 0x288   : > { %v945_v37 = vpop.xlane.xlu0 %944 }
 0x289   : > { %v953_v38 = vsub.f32 %v939_v26, %v945_v37 }
 0x28b   : > { %v956_v39 = vmul.f32 1.442695, %v953_v38 }
 0x28c   : > { %v948_v40 = vpop.xlane.xlu0 %947 }
 0x28d   : > { %2627 = vpow2.f32 %v956_v39  ;;  %v954_v41 = vsub.f32 %v940_v30, %v948_v40 }
 0x28f   : > { %v958_v42 = vmul.f32 1.442695, %v954_v41 }
 0x290   : > { %v952_v47 = vpop.xlane.xlu1 %951 }
 0x291   : > { %2629 = vpow2.f32 %v958_v42  ;;  %v955_v48 = vsub.f32 %v941_v34, %v952_v47 }
 0x293   : > { %v960_v49 = vmul.f32 1.442695, %v955_v48 }
 0x295   : > { %2631 = vpow2.f32 %v960_v49 }
 0x29a   : > { %v2628_v43 = vpop.eup %2627 }
 0x29b   : > { %v962_v44 = vsel %vm942_vm3, %v2628_v43, 0.0 }
 0x29c   : > { %963 = vadd.xlane.f32.xlu1 %v962_v44 }
 0x29e   : > { %v2630_v45 = vpop.eup %2629 }
 0x29f   : > { %v965_v46 = vsel %vm942_vm3, %v2630_v45, 0.0 }
 0x2a0   : > { %966 = vadd.xlane.f32.xlu0 %v965_v46 }
 0x2a2   : > { %v2632_v50 = vpop.eup %2631 }
 0x2a3   : > { %v968_v51 = vsel %vm949_vm4, %v2632_v50, 0.0 }
 0x2ad   : > { %1078 = vrot.lane.b32.xlu1 %v3165_v8, %s2807_s15 }
 0x2b1   : > { %1076 = vrot.lane.b32.xlu1 %v3170_v11, %s2807_s15 }
 0x2b5   : > { %1070 = vrot.lane.b32.xlu1 %v3172_v12, %s2807_s15 }
 0x2b6   : > { %1080 = vrot.lane.b32.xlu0 %v3160_v4, %s2807_s15 }
 0x2ba   : > { %1321 = vrot.lane.b32.xlu0 %v3160_v4, %s2808_s18 }
 0x2be   : > { %1319 = vrot.lane.b32.xlu0 %v3165_v8, %s2808_s18 }
 0x2c2   : > { %1317 = vrot.lane.b32.xlu0 %v3170_v11, %s2808_s18 }
 0x2c6   : > { %1560 = vrot.lane.b32.xlu0 %v3160_v4, %s2809_s27 }
 0x2ca   : > { %1558 = vrot.lane.b32.xlu0 %v3165_v8, %s2809_s27 }
 0x2ce   : > { %1556 = vrot.lane.b32.xlu0 %v3170_v11, %s2809_s27 }
 0x2d2   : > { %1552 = vrot.lane.b32.xlu0 %v3179_v13, %s2809_s27 }
 0x2d9   : > { %969 = vadd.xlane.f32.xlu1 %v968_v51 }
 0x2ea   : > { %1072 = vrot.lane.b32.xlu1 %v3179_v13, %s2807_s15 }
 0x2ee   : > { %1074 = vrot.lane.b32.xlu1 %v3185_v14, %s2807_s15 }
 0x2f2   : > { %1311 = vrot.lane.b32.xlu1 %v3172_v12, %s2808_s18 }
 0x2f6   : > { %1313 = vrot.lane.b32.xlu1 %v3179_v13, %s2808_s18 }
 0x2fa   : > { %1315 = vrot.lane.b32.xlu1 %v3185_v14, %s2808_s18 }
 0x2fe   : > { %1550 = vrot.lane.b32.xlu1 %v3172_v12, %s2809_s27 }
 0x302   : > { %1554 = vrot.lane.b32.xlu1 %v3185_v14, %s2809_s27 }
 0x325   : > { %v964_v52 = vpop.xlane.xlu1 %963 }
 0x326   : > { %2633 = vrcp.f32 %v964_v52 }
 0x329   : > { %v967_v53 = vpop.xlane.xlu0 %966  ;;  %v1079_v58 = vpop.permute.xlu1 %1078 }
 0x32a   : > { %2635 = vrcp.f32 %v967_v53 }
 0x32d   : > { %v1081_v56 = vpop.permute.xlu0 %1080  ;;  %v1077_v60 = vpop.permute.xlu1 %1076 }
 0x331   : > { %v1071_v61 = vpop.permute.xlu1 %1070  ;;  %v1322_v63 = vpop.permute.xlu0 %1321 }
 0x333   : > { %v2634_v54 = vpop.eup %2633 }
 0x334   : > { %v972_v55 = vmul.f32 %v2634_v54, %v2628_v43 }
 0x335   : > { %v1320_v4 = vpop.permute.xlu0 %1319 }
 0x336   : > { %2431 = vmatmul.mubr.msk.f32.vlgmr.msra.gmra.mxu1 %vm942_vm3, %v972_v55 }
 0x337   : > { %v2636_v57 = vpop.eup %2635  ;;  %2440 = vmatpush3.xpose.msk.msra.mxu1 %vm840_vm1, %v1081_v56  ;;  %2433 = vmatprep.mubr.msk.f32.mxu1 %vm2806_vm0, %v2805_v0 }
 0x338   : > { %2441 = vmatprep.subr.mxu1 %v2805_v0  ;;  %v974_v59 = vmul.f32 %v2636_v57, %v2630_v45 }
 0x339   : > { %v1318_v6 = vpop.permute.xlu0 %1317 }
 0x33a   : > { %2434 = vmatmul.mubr.msk.f32.gmra.mxu1 %vm942_vm3, %v974_v59 }
 0x33b   : > { %2442 = vmatpush3.xpose.msk.msra.mxu1 %vm840_vm1, %v1079_v58  ;;  %2436 = vmatprep.mubr.msk.f32.mxu1 %vm2806_vm0, %v2805_v0 }
 0x33c   : > { %2443 = vmatprep.subr.mxu1 %v2805_v0 }
 0x33d   : > { %v1561_v8 = vpop.permute.xlu0 %1560 }
 0x33f   : > { %2444 = vmatpush3.xpose.msk.msra.mxu1 %vm840_vm1, %v1077_v60 }
 0x340   : > { %2469 = vmatprep.subr.mxu1 %v2805_v0 }
 0x341   : > { %v1559_v10 = vpop.permute.xlu0 %1558 }
 0x345   : > { %v1557_v12 = vpop.permute.xlu0 %1556 }
 0x349   : > { %v1553_v14 = vpop.permute.xlu0 %1552 }
 0x362   : > { %v970_v62 = vpop.xlane.xlu1 %969 }
 0x363   : > { %2637 = vrcp.f32 %v970_v62 }
 0x366   : > { %v1073_v2 = vpop.permute.xlu1 %1072 }
 0x36a   : > { %v1075_v5 = vpop.permute.xlu1 %1074 }
 0x36e   : > { %v1312_v7 = vpop.permute.xlu1 %1311 }
 0x370   : > { %v2638_v1 = vpop.eup %2637 }
 0x371   : > { %v976_v3 = vmul.f32 %v2638_v1, %v2632_v50 }
 0x372   : > { %v1314_v9 = vpop.permute.xlu1 %1313 }
 0x373   : > { %2437 = vmatmul.mubr.msk.f32.gmra.mxu1 %vm942_vm3, %v976_v3 }
 0x374   : > { %2445 = vmatprep.mubr.msk.f32.mxu1 %vm2806_vm0, %v2805_v0 }
 0x376   : > { %v1316_v11 = vpop.permute.xlu1 %1315 }
 0x377   : > { %2446 = vmatmul.mubr.msk.f32.vlgmr.msra.gmra.mxu1 %vm840_vm1, %v1071_v61 }
 0x378   : > { %2470 = vmatpush3.xpose.msk.msra.mxu1 %vm840_vm1, %v1322_v63  ;;  %2448 = vmatprep.mubr.msk.f32.mxu1 %vm2806_vm0, %v2805_v0 }
 0x379   : > { %2471 = vmatprep.subr.mxu1 %v2805_v0 }
 0x37a   : > { %v1551_v13 = vpop.permute.xlu1 %1550 }
 0x37b   : > { %2449 = vmatmul.mubr.msk.f32.gmra.mxu1 %vm840_vm1, %v1073_v2 }
 0x37c   : > { %2472 = vmatpush3.xpose.msk.msra.mxu1 %vm840_vm1, %v1320_v4  ;;  %2451 = vmatprep.mubr.msk.f32.mxu1 %vm2806_vm0, %v2805_v0 }
 0x37d   : > { %2473 = vmatprep.subr.mxu1 %v2805_v0 }
 0x37e   : > { %v1555_v15 = vpop.permute.xlu1 %1554 }
 0x37f   : > { %2452 = vmatmul.mubr.msk.f32.gmra.mxu1 %vm840_vm1, %v1075_v5 }
 0x380   : > { %2474 = vmatpush3.xpose.msk.msra.mxu1 %vm840_vm1, %v1318_v6  ;;  %2475 = vmatprep.mubr.msk.f32.mxu1 %vm2806_vm0, %v2805_v0 }
 0x381   : > { %2499 = vmatprep.subr.mxu1 %v2805_v0 }
 0x383   : > { %2476 = vmatmul.mubr.msk.f32.vlgmr.msra.gmra.mxu1 %vm840_vm1, %v1312_v7 }
 0x384   : > { %2500 = vmatpush3.xpose.msk.msra.mxu1 %vm840_vm1, %v1561_v8  ;;  %2478 = vmatprep.mubr.msk.f32.mxu1 %vm2806_vm0, %v2805_v0 }
 0x385   : > { %2501 = vmatprep.subr.mxu1 %v2805_v0 }
 0x387   : > { %2479 = vmatmul.mubr.msk.f32.gmra.mxu1 %vm840_vm1, %v1314_v9 }
 0x388   : > { %2502 = vmatpush3.xpose.msk.msra.mxu1 %vm840_vm1, %v1559_v10  ;;  %2481 = vmatprep.mubr.msk.f32.mxu1 %vm2806_vm0, %v2805_v0 }
 0x389   : > { %2503 = vmatprep.subr.mxu1 %v2805_v0 }
 0x38b   : > { %2482 = vmatmul.mubr.msk.f32.gmra.mxu1 %vm840_vm1, %v1316_v11 }
 0x38c   : > { %2504 = vmatpush3.xpose.msk.msra.mxu1 %vm840_vm1, %v1557_v12  ;;  %2505 = vmatprep.mubr.msk.f32.mxu1 %vm2806_vm0, %v2805_v0 }
 0x38d   : > { %2529 = vmatprep.subr.mxu1 %v2805_v0 }
 0x38f   : > { %2506 = vmatmul.mubr.msk.f32.vlgmr.msra.gmra.mxu1 %vm840_vm1, %v1551_v13 }
 0x390   : > { %2508 = vmatprep.mubr.msk.f32.mxu1 %vm2806_vm0, %v2805_v0 }
 0x393   : > { %2509 = vmatmul.mubr.msk.f32.gmra.mxu1 %vm840_vm1, %v1553_v14 }
 0x394   : > { %2511 = vmatprep.mubr.msk.f32.mxu1 %vm2806_vm0, %v2805_v0 }
 0x397   : > { %2512 = vmatmul.mubr.msk.f32.gmra.mxu1 %vm840_vm1, %v1555_v15 }
 0x398   : > { %2561 = vmatprep.mubr.msk.f32.mxu1 %vm2806_vm0, %v2805_v0 }
 0x3f6   : > { %v3305_v16 = vpop.f32.mrf.mxu1 }
 0x3f8   : > { %v2432_v17 = vpop.f32.mrf.mxu1 }
 0x3fa   : > { %v3307_v18 = vpop.f32.mrf.mxu1 }
 0x3fc   : > { %v2435_v19 = vpop.f32.mrf.mxu1 }
 0x433   : > { %v3309_v20 = vpop.f32.mrf.mxu1 }
 0x435   : > { %v2438_v23 = vpop.f32.mrf.mxu1 }
 0x437   : > { %v1160_v25 = vpop.f32.mrf.mxu1 }
 0x438   : > { %v1174_v26 = vmul.f32 0.17677669, %v1160_v25 }
 0x439   : > { %v2447_v27 = vpop.f32.mrf.mxu1 }
 0x43a   : > { %v1177_v28 = vsel %vm942_vm3, %v1174_v26, -inf }
 0x43b   : > { %1178 = vmax.xlane.f32.xlu0 %v1177_v28  ;;  %v1165_v29 = vpop.f32.mrf.mxu1 }
 0x43c   : > { %v1175_v30 = vmul.f32 0.17677669, %v1165_v29 }
 0x43d   : > { %v2450_v31 = vpop.f32.mrf.mxu1 }
 0x43e   : > { %v1180_v32 = vsel %vm942_vm3, %v1175_v30, -inf }
 0x43f   : > { %1181 = vmax.xlane.f32.xlu1 %v1180_v32  ;;  %v1170_v33 = vpop.f32.mrf.mxu1 }
 0x440   : > { %v3313_v34 = vmul.f32 0.17677669, %v1170_v33 }
 0x441   : > { %v2453_v35 = vpop.f32.mrf.mxu1 }
 0x442   : > { %v1183_v36 = vsel %vm949_vm4, %v3313_v34, -inf }
 0x443   : > { %1184 = vmax.xlane.f32.xlu0 %v1183_v36  ;;  %v1401_v37 = vpop.f32.mrf.mxu1 }
 0x444   : > { %v1415_v38 = vmul.f32 0.17677669, %v1401_v37 }
 0x445   : > { %v2477_v39 = vpop.f32.mrf.mxu1 }
 0x446   : > { %v1418_v40 = vsel %vm942_vm3, %v1415_v38, -inf }
 0x447   : > { %1419 = vmax.xlane.f32.xlu0 %v1418_v40  ;;  %v1406_v41 = vpop.f32.mrf.mxu1 }
 0x448   : > { %v3318_v42 = vmul.f32 0.17677669, %v1406_v41 }
 0x449   : > { %v2480_v43 = vpop.f32.mrf.mxu1 }
 0x44a   : > { %v1421_v44 = vsel %vm942_vm3, %v3318_v42, -inf }
 0x44b   : > { %1422 = vmax.xlane.f32.xlu0 %v1421_v44  ;;  %v1411_v45 = vpop.f32.mrf.mxu1 }
 0x44c   : > { %v1417_v46 = vmul.f32 0.17677669, %v1411_v45 }
 0x44d   : > { %v2483_v47 = vpop.f32.mrf.mxu1 }
 0x44e   : > { %v1424_v48 = vsel %vm949_vm4, %v1417_v46, -inf }
 0x44f   : > { %1425 = vmax.xlane.f32.xlu1 %v1424_v48  ;;  %v1640_v49 = vpop.f32.mrf.mxu1 }
 0x450   : > { %v1654_v50 = vmul.f32 0.17677669, %v1640_v49 }
 0x451   : > { %v2507_v51 = vpop.f32.mrf.mxu1 }
 0x452   : > { %v1657_v52 = vsel %vm942_vm3, %v1654_v50, -inf }
 0x453   : > { %1658 = vmax.xlane.f32.xlu0 %v1657_v52  ;;  %v1645_v53 = vpop.f32.mrf.mxu1 }
 0x454   : > { %v3324_v54 = vmul.f32 0.17677669, %v1645_v53 }
 0x455   : > { %v2510_v55 = vpop.f32.mrf.mxu1 }
 0x456   : > { %v1660_v56 = vsel %vm942_vm3, %v3324_v54, -inf }
 0x457   : > { %1661 = vmax.xlane.f32.xlu1 %v1660_v56  ;;  %v1650_v57 = vpop.f32.mrf.mxu1 }
 0x458   : > { %v1656_v58 = vmul.f32 0.17677669, %v1650_v57 }
 0x459   : > { %v2513_v59 = vpop.f32.mrf.mxu1 }
 0x45a   : > { %v1663_v60 = vsel %vm949_vm4, %v1656_v58, -inf }
 0x45b   : > { %1664 = vmax.xlane.f32.xlu0 %v1663_v60 }
 0x468   : > { %1216 = vrot.lane.b32.xlu1 %v3198_v22, %s2807_s15 }
 0x46c   : > { %1212 = vrot.lane.b32.xlu1 %v3200_v24, %s2807_s15 }
 0x470   : > { %1455 = vrot.lane.b32.xlu1 %v3198_v22, %s2808_s18 }
 0x471   : > { %1214 = vrot.lane.b32.xlu0 %v3196_v21, %s2807_s15 }
 0x474   : > { %1451 = vrot.lane.b32.xlu1 %v3200_v24, %s2808_s18 }
 0x475   : > { %1453 = vrot.lane.b32.xlu0 %v3196_v21, %s2808_s18 }
 0x4c4   : > { %v1179_v61 = vpop.xlane.xlu0 %1178 }
 0x4c5   : > { %v1186_v62 = vsub.f32 %v1174_v26, %v1179_v61 }
 0x4c7   : > { %v1189_v63 = vmul.f32 1.442695, %v1186_v62 }
 0x4c8   : > { %v1182_v1 = vpop.xlane.xlu1 %1181 }
 0x4c9   : > { %2639 = vpow2.f32 %v1189_v63  ;;  %v1187_v2 = vsub.f32 %v1175_v30, %v1182_v1 }
 0x4cb   : > { %v1191_v3 = vmul.f32 1.442695, %v1187_v2 }
 0x4cc   : > { %v1185_v4 = vpop.xlane.xlu0 %1184 }
 0x4cd   : > { %2641 = vpow2.f32 %v1191_v3 }
 0x4d0   : > { %v1420_v5 = vpop.xlane.xlu0 %1419 }
 0x4d1   : > { %v1427_v6 = vsub.f32 %v1415_v38, %v1420_v5 }
 0x4d3   : > { %v1430_v7 = vmul.f32 1.442695, %v1427_v6 }
 0x4d4   : > { %v1423_v10 = vpop.xlane.xlu0 %1422 }
 0x4d5   : > { %2643 = vpow2.f32 %v1430_v7  ;;  %v1428_v43 = vsub.f32 %v3318_v42, %v1423_v10 }
 0x4d6   : > { %v3341_v8 = vpop.eup %2639 }
 0x4d7   : > { %v1195_v9 = vsel %vm942_vm3, %v3341_v8, 0.0  ;;  %v1432_v44 = vmul.f32 1.442695, %v1428_v43  ;;  %v1841_v43 = vld [vmem:[#allocation7 + $0x10] sm:$0xff] }
 0x4d8   : > { %1196 = vadd.xlane.f32.xlu1 %v1195_v9  ;;  %v1426_v11 = vpop.xlane.xlu1 %1425 }
 0x4d9   : > { %v1429_v12 = vsub.f32 %v1417_v46, %v1426_v11 }
 0x4da   : > { %v3345_v13 = vpop.eup %2641 }
 0x4db   : > { %v1434_v14 = vmul.f32 1.442695, %v1429_v12  ;;  %v1198_v15 = vsel %vm942_vm3, %v3345_v13, 0.0 }
 0x4dc   : > { %v1659_v17 = vpop.xlane.xlu0 %1658  ;;  %1199 = vadd.xlane.f32.xlu0 %v1198_v15 }
 0x4dd   : > { %2645 = vpow2.f32 %v1434_v14  ;;  %v1666_v19 = vsub.f32 %v1654_v50, %v1659_v17 }
 0x4df   : > { %v1669_v23 = vmul.f32 1.442695, %v1666_v19 }
 0x4e0   : > { %v1662_v25 = vpop.xlane.xlu1 %1661 }
 0x4e1   : > { %2647 = vpow2.f32 %v1669_v23  ;;  %v1667_v45 = vsub.f32 %v3324_v54, %v1662_v25  ;;  %v1854_v25 = vld [vmem:[#allocation7 + $0x78] sm:$0xff] }
 0x4e2   : > { %v3349_v26 = vpop.eup %2643  ;;  %2530 = vmatpush3.msra.mxu1 %v1854_v25 }
 0x4e3   : > { %v1436_v27 = vsel %vm942_vm3, %v3349_v26, 0.0  ;;  %v1671_v46 = vmul.f32 1.442695, %v1667_v45  ;;  %2531 = vmatprep.subr.mxu1 %v2805_v0  ;;  %v1840_v45 = vld [vmem:[#allocation7 + $0x8] sm:$0xff] }
 0x4e4   : > { %v1665_v28 = vpop.xlane.xlu0 %1664  ;;  %1437 = vadd.xlane.f32.xlu0 %v1436_v27  ;;  %v1217_v29 = vpop.permute.xlu1 %1216  ;;  %v1852_v27 = vld [vmem:[#allocation7 + $0x68] sm:$0xff] }
 0x4e5   : > { %v1668_v30 = vsub.f32 %v1656_v58, %v1665_v28  ;;  %2455 = vmatpush3.msk.msra.mxu0 %vm986_vm2, %v1217_v29  ;;  %v1851_v28 = vld [vmem:[#allocation7 + $0x60] sm:$0xff]  ;;  %v1850_v29 = vld [vmem:[#allocation7 + $0x58] sm:$0xff] }
 0x4e6   : > { %2456 = vmatprep.subr.mxu0 %v2805_v0 }
 0x4e7   : > { %v1673_v31 = vmul.f32 1.442695, %v1668_v30 }
 0x4e8   : > { %v1215_v32 = vpop.permute.xlu0 %1214  ;;  %v1213_v35 = vpop.permute.xlu1 %1212 }
 0x4e9   : > { %2649 = vpow2.f32 %v1673_v31  ;;  %1694 = vrot.lane.b32.xlu1 %v3198_v22, %s2809_s27  ;;  %2457 = vmatpush3.msra.mxu0 %v1215_v32  ;;  %v1188_v22 = vsub.f32 %v3313_v34, %v1185_v4  ;;  %v1849_v31 = vld [vmem:[#allocation7 + $0x50] sm:$0xff] }
 0x4ea   : > { %v3357_v33 = vpop.eup %2645  ;;  %2458 = vmatprep.subr.mxu0 %v2805_v0 }
 0x4eb   : > { %2459 = vmatpush3.msra.mxu0 %v1213_v35  ;;  %v1442_v36 = vsel %vm949_vm4, %v3357_v33, 0.0  ;;  %v1193_v41 = vmul.f32 1.442695, %v1188_v22  ;;  %v1845_v22 = vld [vmem:[#allocation7 + $0x30] sm:$0xff] }
 0x4ec   : > { %1443 = vadd.xlane.f32.xlu0 %v1442_v36  ;;  %2484 = vmatprep.subr.mxu0 %v2805_v0  ;;  %v1456_v51 = vpop.permute.xlu1 %1455  ;;  %v1454_v53 = vpop.permute.xlu0 %1453  ;;  %v1847_v36 = vld [vmem:[#allocation7 + $0x40] sm:$0xff] }
 0x4ed   : > { %2651 = vpow2.f32 %v1193_v41  ;;  %v1842_v41 = vld [vmem:[#allocation7 + $0x18] sm:$0xff] }
 0x4ee   : > { %v3363_v37 = vpop.eup %2647  ;;  %2653 = vpow2.f32 %v1432_v44 }
 0x4ef   : > { %v1675_v38 = vsel %vm942_vm3, %v3363_v37, 0.0  ;;  %2655 = vpow2.f32 %v1671_v46 }
 0x4f0   : > { %1676 = vadd.xlane.f32.xlu0 %v1675_v38  ;;  %v1452_v52 = vpop.permute.xlu1 %1451  ;;  %v1846_v38 = vld [vmem:[#allocation7 + $0x38] sm:$0xff] }
 0x4f6   : > { %v3368_v39 = vpop.eup %2649 }
 0x4f7   : > { %v1681_v40 = vsel %vm949_vm4, %v3368_v39, 0.0 }
 0x4f8   : > { %1682 = vadd.xlane.f32.xlu0 %v1681_v40  ;;  %v1843_v40 = vld [vmem:[#allocation7 + $0x20] sm:$0xff] }
 0x4fa   : > { %v2652_v47 = vpop.eup %2651 }
 0x4fb   : > { %v1201_v48 = vsel %vm949_vm4, %v2652_v47, 0.0  ;;  %v2654_v34 = vpop.eup %2653 }
 0x4fc   : > { %v1439_v49 = vsel %vm942_vm3, %v2654_v34, 0.0  ;;  %v3378_v50 = vpop.eup %2655 }
 0x4fd   : > { %v1678_v42 = vsel %vm942_vm3, %v3378_v50, 0.0 }
 0x50d   : > { %1202 = vadd.xlane.f32.xlu1 %v1201_v48  ;;  %v1839_v48 = vld [vmem:[#allocation7] sm:$0xff] }
 0x50e   : > { %1690 = vrot.lane.b32.xlu0 %v3200_v24, %s2809_s27 }
 0x511   : > { %1440 = vadd.xlane.f32.xlu1 %v1439_v49 }
 0x515   : > { %1679 = vadd.xlane.f32.xlu1 %v1678_v42 }
 0x526   : > { %1692 = vrot.lane.b32.xlu1 %v3196_v21, %s2809_s27 }
 0x561   : > { %v1197_v54 = vpop.xlane.xlu1 %1196 }
 0x562   : > { %2657 = vrcp.f32 %v1197_v54 }
 0x565   : > { %v1200_v55 = vpop.xlane.xlu0 %1199  ;;  %v1695_v58 = vpop.permute.xlu1 %1694 }
 0x566   : > { %2659 = vrcp.f32 %v1200_v55 }
 0x56d   : > { %v1438_v59 = vpop.xlane.xlu0 %1437 }
 0x56f   : > { %v2658_v24 = vpop.eup %2657 }
 0x570   : > { %v1205_v56 = vmul.f32 %v2658_v24, %v3341_v8 }
 0x572   : > { %2461 = vmatmul.mubr.msk.f32.vlgmr.msra.gmra.mxu0 %vm942_vm3, %v1205_v56 }
 0x573   : > { %v2660_v57 = vpop.eup %2659  ;;  %2485 = vmatpush3.msk.msra.mxu0 %vm986_vm2, %v1456_v51  ;;  %2463 = vmatprep.mubr.msk.f32.mxu0 %vm2806_vm0, %v2805_v0 }
 0x574   : > { %2486 = vmatprep.subr.mxu0 %v2805_v0  ;;  %v1207_v21 = vmul.f32 %v2660_v57, %v3345_v13 }
 0x575   : > { %2487 = vmatpush3.msra.mxu0 %v1454_v53  ;;  %v1444_v62 = vpop.xlane.xlu0 %1443 }
 0x576   : > { %2488 = vmatprep.subr.mxu0 %v2805_v0  ;;  %2464 = vmatmul.mubr.msk.f32.gmra.mxu0 %vm942_vm3, %v1207_v21 }
 0x577   : > { %2489 = vmatpush3.msra.mxu0 %v1452_v52  ;;  %2466 = vmatprep.mubr.msk.f32.mxu0 %vm2806_vm0, %v2805_v0 }
 0x578   : > { %2514 = vmatprep.subr.mxu0 %v2805_v0 }
 0x579   : > { %v1677_v63 = vpop.xlane.xlu0 %1676 }
 0x581   : > { %v1683_v6 = vpop.xlane.xlu0 %1682 }
 0x585   : > { %v1691_v11 = vpop.permute.xlu0 %1690 }
 0x596   : > { %v1203_v60 = vpop.xlane.xlu1 %1202 }
 0x597   : > { %2661 = vrcp.f32 %v1203_v60 }
 0x598   : > { %2663 = vrcp.f32 %v1438_v59 }
 0x59a   : > { %v1441_v61 = vpop.xlane.xlu1 %1440 }
 0x59b   : > { %2665 = vrcp.f32 %v1441_v61 }
 0x59c   : > { %2667 = vrcp.f32 %v1444_v62 }
 0x59d   : > { %2669 = vrcp.f32 %v1677_v63 }
 0x59e   : > { %v1680_v4 = vpop.xlane.xlu1 %1679 }
 0x59f   : > { %2671 = vrcp.f32 %v1680_v4 }
 0x5a0   : > { %2673 = vrcp.f32 %v1683_v6 }
 0x5a2   : > { %v1693_v8 = vpop.permute.xlu1 %1692 }
 0x5a4   : > { %v2662_v1 = vpop.eup %2661 }
 0x5a5   : > { %v1209_v2 = vmul.f32 %v2662_v1, %v2652_v47  ;;  %v2664_v3 = vpop.eup %2663 }
 0x5a6   : > { %v1446_v5 = vmul.f32 %v2664_v3, %v3349_v26  ;;  %v1853_v26 = vld [vmem:[#allocation7 + $0x70] sm:$0xff] }
 0x5a7   : > { %2467 = vmatmul.mubr.msk.f32.gmra.mxu0 %vm942_vm3, %v1209_v2  ;;  %2532 = vmatpush3.msra.mxu1 %v1853_v26 }
 0x5a8   : > { %2490 = vmatprep.mubr.msk.f32.mxu0 %vm2806_vm0, %v2805_v0  ;;  %v2666_v7 = vpop.eup %2665  ;;  %2533 = vmatprep.subr.mxu1 %v2805_v0 }
 0x5a9   : > { %v1448_v9 = vmul.f32 %v2666_v7, %v2654_v34  ;;  %v2668_v10 = vpop.eup %2667  ;;  %2534 = vmatpush3.msra.mxu1 %v1852_v27 }
 0x5aa   : > { %v1450_v12 = vmul.f32 %v2668_v10, %v3357_v33  ;;  %v2670_v13 = vpop.eup %2669  ;;  %2535 = vmatprep.subr.mxu1 %v2805_v0  ;;  %v1848_v33 = vld [vmem:[#allocation7 + $0x48] sm:$0xff] }
 0x5ab   : > { %2491 = vmatmul.mubr.msk.f32.vlgmr.msra.gmra.mxu0 %vm942_vm3, %v1446_v5  ;;  %v1685_v14 = vmul.f32 %v2670_v13, %v3363_v37  ;;  %2536 = vmatpush3.msra.mxu1 %v1851_v28 }
 0x5ac   : > { %2515 = vmatpush3.msk.msra.mxu0 %vm986_vm2, %v1695_v58  ;;  %2493 = vmatprep.mubr.msk.f32.mxu0 %vm2806_vm0, %v2805_v0  ;;  %v2672_v15 = vpop.eup %2671 }
 0x5ad   : > { %2516 = vmatprep.subr.mxu0 %v2805_v0  ;;  %v1687_v17 = vmul.f32 %v2672_v15, %v3378_v50  ;;  %v2674_v19 = vpop.eup %2673  ;;  %2537 = vmatprep.subr.mxu1 %v2805_v0 }
 0x5ae   : > { %2517 = vmatpush3.msra.mxu0 %v1693_v8  ;;  %v1689_v23 = vmul.f32 %v2674_v19, %v3368_v39  ;;  %2538 = vmatpush3.msra.mxu1 %v1850_v29  ;;  %v1844_v39 = vld [vmem:[#allocation7 + $0x28] sm:$0xff] }
 0x5af   : > { %2518 = vmatprep.subr.mxu0 %v2805_v0  ;;  %2494 = vmatmul.mubr.msk.f32.gmra.mxu0 %vm942_vm3, %v1448_v9  ;;  %v2159_v9 = vld [vmem:[%s3487_s10] ss:$0 sm:$0xff] }
 0x5b0   : > { %2519 = vmatpush3.msra.mxu0 %v1691_v11  ;;  %2496 = vmatprep.mubr.msk.f32.mxu0 %vm2806_vm0, %v2805_v0 }
 0x5b1   : > { %2539 = vmatprep.subr.mxu1 %v2805_v0 }
 0x5b2   : > { %2540 = vmatpush3.msra.mxu1 %v1849_v31 }
 0x5b3   : > { %2497 = vmatmul.mubr.msk.f32.gmra.mxu0 %vm942_vm3, %v1450_v12  ;;  %2541 = vmatprep.subr.mxu1 %v2805_v0 }
 0x5b4   : > { %2520 = vmatprep.mubr.msk.f32.mxu0 %vm2806_vm0, %v2805_v0  ;;  %2542 = vmatpush3.msra.mxu1 %v1848_v33 }
 0x5b5   : > { %2543 = vmatprep.subr.mxu1 %v2805_v0 }
 0x5b6   : > { %2544 = vmatpush3.msra.mxu1 %v1847_v36 }
 0x5b7   : > { %2521 = vmatmul.mubr.msk.f32.vlgmr.msra.gmra.mxu0 %vm942_vm3, %v1685_v14  ;;  %2545 = vmatprep.subr.mxu1 %v2805_v0 }
 0x5b8   : > { %2523 = vmatprep.mubr.msk.f32.mxu0 %vm2806_vm0, %v2805_v0  ;;  %2546 = vmatpush3.msra.mxu1 %v1846_v38 }
 0x5b9   : > { %2547 = vmatprep.subr.mxu1 %v2805_v0 }
 0x5ba   : > { %2548 = vmatpush3.msra.mxu1 %v1845_v22 }
 0x5bb   : > { %2524 = vmatmul.mubr.msk.f32.gmra.mxu0 %vm942_vm3, %v1687_v17  ;;  %2549 = vmatprep.subr.mxu1 %v2805_v0 }
 0x5bc   : > { %2526 = vmatprep.mubr.msk.f32.mxu0 %vm2806_vm0, %v2805_v0  ;;  %2550 = vmatpush3.msra.mxu1 %v1844_v39 }
 0x5bd   : > { %2551 = vmatprep.subr.mxu1 %v2805_v0 }
 0x5be   : > { %2552 = vmatpush3.msra.mxu1 %v1843_v40 }
 0x5bf   : > { %2527 = vmatmul.mubr.msk.f32.gmra.mxu0 %vm942_vm3, %v1689_v23  ;;  %2553 = vmatprep.subr.mxu1 %v2805_v0 }
 0x5c0   : > { %2554 = vmatpush3.msra.mxu1 %v1842_v41 }
 0x5c1   : > { %2555 = vmatprep.subr.mxu1 %v2805_v0 }
 0x5c2   : > { %2556 = vmatpush3.msra.mxu1 %v1841_v43 }
 0x5c3   : > { %2557 = vmatprep.subr.mxu1 %v2805_v0 }
 0x5c4   : > { %2558 = vmatpush3.msra.mxu1 %v1840_v45 }
 0x5c5   : > { %2559 = vmatprep.subr.mxu1 %v2805_v0 }
 0x5c6   : > { %2560 = vmatpush3.msra.mxu1 %v1839_v48 }
 0x632   : > { %v1297_v30 = vpop.f32.mrf.mxu0 }
 0x633   : > { %1792 = vrot.lane.b32.xlu1 %v1297_v30, %s2809_s27 }
 0x634   : > { %v2462_v32 = vpop.f32.mrf.mxu0 }
 0x636   : > { %v1302_v35 = vpop.f32.mrf.mxu0 }
 0x637   : > { %1794 = vrot.lane.b32.xlu0 %v1302_v35, %s2809_s27 }
 0x638   : > { %v2465_v37 = vpop.f32.mrf.mxu0 }
 0x667   : > { %v1307_v44 = vpop.f32.mrf.mxu0 }
 0x669   : > { %v2468_v46 = vpop.f32.mrf.mxu0 }
 0x66b   : > { %v1536_v47 = vpop.f32.mrf.mxu0 }
 0x66c   : > { %1804 = vrot.lane.b32.xlu0 %v1536_v47, %s2808_s18 }
 0x66d   : > { %v2492_v34 = vpop.f32.mrf.mxu0 }
 0x66f   : > { %v1541_v49 = vpop.f32.mrf.mxu0 }
 0x670   : > { %1806 = vrot.lane.b32.xlu1 %v1541_v49, %s2808_s18 }
 0x671   : > { %v2495_v50 = vpop.f32.mrf.mxu0 }
 0x673   : > { %v1546_v42 = vpop.f32.mrf.mxu0 }
 0x675   : > { %v2498_v51 = vpop.f32.mrf.mxu0 }
 0x677   : > { %v1775_v52 = vpop.f32.mrf.mxu0 }
 0x678   : > { %1816 = vrot.lane.b32.xlu1 %v1775_v52, %s2807_s15 }
 0x679   : > { %v2522_v53 = vpop.f32.mrf.mxu0 }
 0x67b   : > { %v1780_v54 = vpop.f32.mrf.mxu0 }
 0x67c   : > { %1796 = vrot.lane.b32.xlu1 %v1307_v44, %s2809_s27  ;;  %1818 = vrot.lane.b32.xlu0 %v1780_v54, %s2807_s15 }
 0x67d   : > { %v2525_v55 = vpop.f32.mrf.mxu0 }
 0x67f   : > { %v1785_v24 = vpop.f32.mrf.mxu0 }
 0x680   : > { %1808 = vrot.lane.b32.xlu0 %v1546_v42, %s2808_s18  ;;  %1820 = vrot.lane.b32.xlu1 %v1785_v24, %s2807_s15 }
 0x681   : > { %v2528_v56 = vpop.f32.mrf.mxu0 }
 0x6a5   : > { %v1793_v57 = vpop.permute.xlu1 %1792 }
 0x6a6   : > { %v1825_v60 = vsel %vm840_vm1, %v3305_v16, %v1793_v57 }
 0x6a9   : > { %v1795_v21 = vpop.permute.xlu0 %1794 }
 0x6aa   : > { %v1826_v1 = vsel %vm840_vm1, %v3307_v18, %v1795_v21 }
 0x6de   : > { %v1805_v59 = vpop.permute.xlu0 %1804 }
 0x6df   : > { %v1829_v61 = vsel %vm1828_vm5, %v1825_v60, %v1805_v59 }
 0x6e2   : > { %v1807_v58 = vpop.permute.xlu1 %1806 }
 0x6e3   : > { %v1830_v16 = vsel %vm1828_vm5, %v1826_v1, %v1807_v58 }
 0x6ea   : > { %v1817_v62 = vpop.permute.xlu1 %1816 }
 0x6eb   : > { %v1833_v63 = vsel %vm1832_vm6, %v1829_v61, %v1817_v62 }
 0x6ec   : > { %1836 = vst [vmem:[%s521_s25] sm:$0xff] %v1833_v63  ;;  %2562 = vmatmul.mubr.f32.vlgmr.msra.gmra.mxu1 %v1833_v63 }
 0x6ed   : > { %2564 = vmatprep.mubr.msk.f32.mxu1 %vm2806_vm0, %v2805_v0 }
 0x6ee   : > { %v1797_v2 = vpop.permute.xlu1 %1796  ;;  %v1819_v3 = vpop.permute.xlu0 %1818 }
 0x6ef   : > { %v1834_v4 = vsel %vm1832_vm6, %v1830_v16, %v1819_v3  ;;  %v1827_v5 = vsel %vm840_vm1, %v3309_v20, %v1797_v2 }
 0x6f0   : > { %1837 = vst [vmem:[%s521_s25 + $0x8] sm:$0xff] %v1834_v4  ;;  %2565 = vmatmul.mubr.f32.gmra.mxu1 %v1834_v4 }
 0x6f1   : > { %2567 = vmatprep.mubr.msk.f32.mxu1 %vm2806_vm0, %v2805_v0 }
 0x6f2   : > { %v1809_v6 = vpop.permute.xlu0 %1808  ;;  %v1821_v18 = vpop.permute.xlu1 %1820 }
 0x6f3   : > { %v1831_v7 = vsel %vm1828_vm5, %v1827_v5, %v1809_v6 }
 0x6f4   : > { %v1835_v8 = vsel %vm1832_vm6, %v1831_v7, %v1821_v18 }
 0x6f5   : > { %1838 = vst [vmem:[%s521_s25 + $0x10] sm:$0x1] %v1835_v8  ;;  %2568 = vmatmul.mubr.f32.gmra.mxu1 %v1835_v8 }
 0x7ac   : > { %v1928_v0 = vpop.f32.mrf.mxu1 }
 0x7ad   : > { %v1929_v10 = vadd.f32 %v2159_v9, %v1928_v0 }
 0x7ae   : > { %v2563_v11 = vpop.f32.mrf.mxu1 }
 0x7af   : > { %1942 = vst [vmem:[%s516_s17] sm:$0xff] %v1929_v10 }
 0x7b0   : > { %v1933_v20 = vpop.f32.mrf.mxu1 }
 0x7b1   : > { %v1934_v12 = vadd.f32 %v2159_v9, %v1933_v20 }
 0x7b2   : > { %v2566_v13 = vpop.f32.mrf.mxu1 }
 0x7b3   : > { %1943 = vst [vmem:[%s516_s17 + $0x8] sm:$0xff] %v1934_v12 }
 0x7b5   : > { %v1938_v14 = vpop.f32.mrf.mxu1 }
 0x7b6   : > { %v1939_v15 = vadd.f32 %v2159_v9, %v1938_v14 }
 0x7b7   : > { %v2569_v17 = vpop.f32.mrf.mxu1 }
 0x7b8   : > { %1944 = vst [vmem:[%s516_s17 + $0x10] sm:$0x1] %v1939_v15 }
 0x7b9 PF: > { %s26_s21 = sadd.s32 1, %s2797_s21  }
 0x7ba   : > { %p23_p3 = scmp.ge.s32.totalorder %s26_s21, 4  }
 0x7bc   :  { %25 = sbr.rel (!%p23_p3) target bundleno = 3 (0x3), region = 129 }
 0x7c1   :  { %1982 = vsyncpa [#allocation3], 1 }
 0x7c2   :  { %1984 = vsyncpa [#allocation3 + $0x1], 1 }
 0x7c3   :  { %1985 = vsyncpa [#allocation5], 1 }
 0x7c4   :  { %1986 = vsyncpa [#allocation8], 1 }

</bundles_post_ra>
